<compile_context>
chip_gen: v6e
topology: v6e:2x2x1
jax: 0.10.0
libtpu: 0.0.40
codegen_flags: <defaults>
</compile_context>

<pallas_src>
import functools
import re

import jax
import jax.numpy as jnp
import numpy as np
from jax import lax
from jax.experimental import pallas as pl
from jax.experimental.pallas import tpu as pltpu

_LANE = 128
_VMEM_LIMIT = 32 * 1024 * 1024  # explicit scoped-VMEM budget (v5e default is 16 MiB)


def _round_up(n, m):
    return ((n + m - 1) // m) * m


def _tpu_generation():
    try:
        kind = jax.devices()[0].device_kind.lower()
        m = re.search(r"v(\d+)", kind)
        return int(m.group(1)) if m else 0
    except Exception:  # pragma: no cover - defensive
        return 0


_GEN = _tpu_generation()


def _choose_tile_m(M, *, want=None):
    """Pick (tile_m, grid_m).

    Blocks are either 8-aligned or full-extent.  On v7x (2 TensorCores) we
    force >= 2 blocks whenever M >= 16 so the 'parallel' grid axis can shard
    across cores; on v5e we prefer 128-row tiles (MXU M granularity), on
    v6e/v7x 512-row tiles (amortize the ~0.35us per-grid-step overhead).
    """
    if want is None:
        want = 128 if _GEN == 5 else 512
    if M <= want:
        if _GEN >= 7 and M >= 16:
            tm = _round_up(pl.cdiv(M, 2), 8)
            return tm, pl.cdiv(M, tm)
        return M, 1  # full-extent block (legal even if M % 8 != 0)
    return want, pl.cdiv(M, want)


# ----------------------------------------------------------------------------
# Pallas kernel: y = relu?(x @ w + b)   (bf16 MXU inputs, f32 accumulation)
# ----------------------------------------------------------------------------
def _linear_kernel(x_ref, w_ref, b_ref, o_ref, *, apply_relu):
    y = jnp.dot(x_ref[...], w_ref[...], preferred_element_type=jnp.float32)
    y = y + b_ref[...]
    if apply_relu:
        y = jnp.maximum(y, 0.0)
    o_ref[...] = y.astype(o_ref.dtype)


def pallas_linear(x, w, b, *, relu, out_dtype=jnp.float32):
    """x: (M, K), w: (K, N), b: (N,) -> (M, N). bf16 MXU inputs, f32 accumulate."""
    M, K = x.shape
    Kw, N = w.shape
    assert K == Kw, (K, Kw)
    x = x.astype(jnp.bfloat16)
    w = w.astype(jnp.bfloat16)
    b2 = b.astype(jnp.float32).reshape(1, N)

    tm, grid_m = _choose_tile_m(M)

    cost = pl.CostEstimate(
        flops=2 * M * K * N,
        transcendentals=0,
        bytes_accessed=M * K * 2 + K * N * 2 + N * 4
        + M * N * np.dtype(out_dtype).itemsize,
    )
    return pl.pallas_call(
        functools.partial(_linear_kernel, apply_relu=relu),
        out_shape=jax.ShapeDtypeStruct((M, N), out_dtype),
        grid=(grid_m,),
        in_specs=[
            pl.BlockSpec((tm, K), lambda i: (i, 0)),
            pl.BlockSpec((K, N), lambda i: (0, 0)),
            pl.BlockSpec((1, N), lambda i: (0, 0)),
        ],
        out_specs=pl.BlockSpec((tm, N), lambda i: (i, 0)),
        compiler_params=pltpu.CompilerParams(
            dimension_semantics=("parallel",),
            vmem_limit_bytes=_VMEM_LIMIT,
        ),
        cost_estimate=cost,
    )(x, w, b2)


# ----------------------------------------------------------------------------
# Pallas kernel: fused conv3 + flatten + fc1 + fc2
#   patches: (P, B, Kc) per-spatial-position im2col rows of conv2's output
#   For each position p:  a_p = relu(patch_p @ wc3 + bc3)        (B, C3)
#   fc1 pre-act:          h   = sum_p a_p @ w1[p]                (B, H)
#   head:                 q   = relu(h + b1) @ w2 + b2           (B, Nout)
#   (equivalent to flatten-HWC followed by fc1/fc2; avoids in-kernel reshape)
# ----------------------------------------------------------------------------
def _fused_head_kernel(p_ref, wc_ref, bc_ref, w1_ref, b1_ref, w2_ref, b2_ref,
                       o_ref, *, num_pos):
    h = None
    for p in range(num_pos):  # static unroll (num_pos = 4 for 2x2 conv3 output)
        a = jnp.dot(p_ref[p], wc_ref[...], preferred_element_type=jnp.float32)
        a = jnp.maximum(a + bc_ref[...], 0.0).astype(jnp.bfloat16)
        c = jnp.dot(a, w1_ref[p], preferred_element_type=jnp.float32)
        h = c if h is None else h + c
    h = jnp.maximum(h + b1_ref[...], 0.0).astype(jnp.bfloat16)
    q = jnp.dot(h, w2_ref[...], preferred_element_type=jnp.float32)
    o_ref[...] = (q + b2_ref[...]).astype(o_ref.dtype)


def pallas_fused_head(patches, wc, bc, w1, b1, w2, b2):
    """patches: (P, B, Kc); wc: (Kc, C3); w1: (P, C3, H); w2: (H, Nout) -> (B, Nout) f32."""
    P, B, Kc = patches.shape
    Kc2, C3 = wc.shape
    P1, C3b, H = w1.shape
    Hb, Nout = w2.shape
    assert Kc == Kc2 and P == P1 and C3 == C3b and H == Hb

    # Lane-dense final store even when num_actions*N is not a 128-multiple.
    Nout_p = _round_up(Nout, _LANE)
    if Nout_p != Nout:
        w2 = jnp.pad(w2, ((0, 0), (0, Nout_p - Nout)))
        b2 = jnp.pad(b2, (0, Nout_p - Nout))

    patches = patches.astype(jnp.bfloat16)
    wc = wc.astype(jnp.bfloat16)
    w1 = w1.astype(jnp.bfloat16)
    w2 = w2.astype(jnp.bfloat16)
    bc = bc.astype(jnp.float32).reshape(1, C3)
    b1 = b1.astype(jnp.float32).reshape(1, H)
    b2 = b2.astype(jnp.float32).reshape(1, Nout_p)

    tb, grid_b = _choose_tile_m(B)

    cost = pl.CostEstimate(
        flops=2 * B * P * Kc * C3 + 2 * B * P * C3 * H + 2 * B * H * Nout_p,
        transcendentals=0,
        bytes_accessed=P * B * Kc * 2 + Kc * C3 * 2 + P * C3 * H * 2
        + H * Nout_p * 2 + C3 * 4 + H * 4 + Nout_p * 4 + B * Nout_p * 4,
    )
    out = pl.pallas_call(
        functools.partial(_fused_head_kernel, num_pos=P),
        out_shape=jax.ShapeDtypeStruct((B, Nout_p), jnp.float32),
        grid=(grid_b,),
        in_specs=[
            pl.BlockSpec((P, tb, Kc), lambda i: (0, i, 0)),
            pl.BlockSpec((Kc, C3), lambda i: (0, 0)),
            pl.BlockSpec((1, C3), lambda i: (0, 0)),
            pl.BlockSpec((P, C3, H), lambda i: (0, 0, 0)),
            pl.BlockSpec((1, H), lambda i: (0, 0)),
            pl.BlockSpec((H, Nout_p), lambda i: (0, 0)),
            pl.BlockSpec((1, Nout_p), lambda i: (0, 0)),
        ],
        out_specs=pl.BlockSpec((tb, Nout_p), lambda i: (i, 0)),
        compiler_params=pltpu.CompilerParams(
            dimension_semantics=("parallel",),
            vmem_limit_bytes=_VMEM_LIMIT,
        ),
        cost_estimate=cost,
    )(patches, wc, bc, w1, b1, w2, b2)
    return out[:, :Nout] if Nout_p != Nout else out


# ----------------------------------------------------------------------------
# Plain-JAX, precision-matched equivalents of the two kernels
# ----------------------------------------------------------------------------
def _jax_linear(x, w, b, *, relu, out_dtype=jnp.float32):
    y = jnp.dot(x.astype(jnp.bfloat16), w.astype(jnp.bfloat16),
                preferred_element_type=jnp.float32)
    y = y + b.astype(jnp.float32).reshape(1, -1)
    if relu:
        y = jnp.maximum(y, 0.0)
    return y.astype(out_dtype)


def _jax_fused_head(patches, wc, bc, w1, b1, w2, b2):
    P = patches.shape[0]
    patches = patches.astype(jnp.bfloat16)
    wc = wc.astype(jnp.bfloat16)
    w1 = w1.astype(jnp.bfloat16)
    w2 = w2.astype(jnp.bfloat16)
    bcf = bc.astype(jnp.float32).reshape(1, -1)
    b1f = b1.astype(jnp.float32).reshape(1, -1)
    b2f = b2.astype(jnp.float32).reshape(1, -1)
    h = None
    for p in range(P):
        a = jnp.dot(patches[p], wc, preferred_element_type=jnp.float32)
        a = jnp.maximum(a + bcf, 0.0).astype(jnp.bfloat16)
        c = jnp.dot(a, w1[p], preferred_element_type=jnp.float32)
        h = c if h is None else h + c
    h = jnp.maximum(h + b1f, 0.0).astype(jnp.bfloat16)
    return jnp.dot(h, w2, preferred_element_type=jnp.float32) + b2f


# ----------------------------------------------------------------------------
# im2col glue (plain JAX): VALID conv, stride S, kernel KxK, NHWC input.
# ----------------------------------------------------------------------------
def _im2col(x, K, S):
    """Rows ordered (b, oh, ow); columns ordered (kh, kw, ci)."""
    B, H, W, C = x.shape
    Ho = (H - K) // S + 1
    Wo = (W - K) // S + 1
    cols = []
    for kh in range(K):
        for kw in range(K):
            cols.append(
                lax.slice(
                    x,
                    (0, kh, kw, 0),
                    (B, kh + S * (Ho - 1) + 1, kw + S * (Wo - 1) + 1, C),
                    (1, S, S, 1),
                )
            )  # (B, Ho, Wo, C)
    p = jnp.concatenate(cols, axis=3)  # (B, Ho, Wo, K*K*C)
    return p.reshape(B * Ho * Wo, K * K * C), Ho, Wo


def _im2col_pos_major(x, K, S):
    """Position-major patches: (P, B, K*K*C) with P = Ho*Wo, p = oh*Wo+ow."""
    B, H, W, C = x.shape
    Ho = (H - K) // S + 1
    Wo = (W - K) // S + 1
    pos = []
    for oh in range(Ho):
        for ow in range(Wo):
            patch = lax.slice(x, (0, oh * S, ow * S, 0),
                              (B, oh * S + K, ow * S + K, C))
            pos.append(patch.reshape(B, K * K * C))
    return jnp.stack(pos, axis=0), Ho, Wo


def conv_relu(x, w, b, K, S, linear_fn):
    """x: (B,H,W,Cin) NHWC; w: (K,K,Cin,Cout) HWIO; b: (Cout,).
    Returns (B,Ho,Wo,Cout) bf16.  The kernel stores a lane-dense 128-wide
    output (zero-padded channels); the pad is sliced off here so it never
    leaks into the next layer's contraction dim."""
    B, H, W, Cin = x.shape
    Kh, Kw, Cin_w, Cout = w.shape
    assert Kh == K and Kw == K and Cin == Cin_w, (w.shape, x.shape)
    Cout_p = _round_up(Cout, _LANE)
    if Cout_p != Cout:
        w = jnp.pad(w, ((0, 0), (0, 0), (0, 0), (0, Cout_p - Cout)))
        b = jnp.pad(b, (0, Cout_p - Cout))
    patches, Ho, Wo = _im2col(x, K, S)
    y = linear_fn(patches, w.reshape(K * K * Cin, Cout_p), b,
                  relu=True, out_dtype=jnp.bfloat16)
    return y.reshape(B, Ho, Wo, Cout_p)[..., :Cout]


# ----------------------------------------------------------------------------
# QRDQN forward (dueling_net=False, noisy_net=False)
# ----------------------------------------------------------------------------
def _forward_impl(params, states_nchw, *, num_actions, N, linear_fn, head_fn,
                  fold_mean=False):
    B = states_nchw.shape[0]
    # layout: NCHW (PyTorch) -> NHWC (kernel) at entry; bf16 activations.
    x = jnp.transpose(states_nchw, (0, 2, 3, 1)).astype(jnp.bfloat16)
    x = conv_relu(x, params["conv1_w"], params["conv1_b"], 8, 4, linear_fn)
    x = conv_relu(x, params["conv2_w"], params["conv2_b"], 4, 2, linear_fn)

    # --- fused conv3 + flatten + fc1 + fc2 (single pallas_call) ---
    Cin3 = x.shape[-1]
    assert Cin3 == params["conv3_w"].shape[2]
    patches, Ho3, Wo3 = _im2col_pos_major(x, 3, 1)      # (P, B, 3*3*Cin3)
    P = Ho3 * Wo3
    C3 = params["conv3_w"].shape[3]
    wc3 = params["conv3_w"].reshape(3 * 3 * Cin3, C3)
    # Flatten order is HWC (position-major), so fc1's rows split cleanly per
    # spatial position.  Real PyTorch checkpoints flatten CHW and would need a
    # row permutation of fc1_w first — weights here are synthetic.
    w1_split = params["fc1_w"].reshape(P, C3, -1)

    w2, b2 = params["fc2_w"], params["fc2_b"]
    if fold_mean:
        # mean over the N quantiles is linear -> fold it into fc2 (exact).
        w2 = w2.reshape(w2.shape[0], N, num_actions).mean(axis=1)
        b2 = b2.reshape(N, num_actions).mean(axis=0)

    q = head_fn(patches, wc3, params["conv3_b"], w1_split, params["fc1_b"],
                w2, b2)
    if fold_mean:
        return q                                        # (B, num_actions)
    return q.reshape(B, N, num_actions)                 # PyTorch .view(B, N, A)


def qrdqn_forward(params, states_nchw, *, num_actions, N):
    return _forward_impl(params, states_nchw, num_actions=num_actions, N=N,
                         linear_fn=pallas_linear, head_fn=pallas_fused_head)


def qrdqn_calculate_q(params, states_nchw, *, num_actions, N):
    return _forward_impl(params, states_nchw, num_actions=num_actions, N=N,
                         linear_fn=pallas_linear, head_fn=pallas_fused_head,
                         fold_mean=True)


def reference_forward_matched(params, states_nchw, *, num_actions, N):
    """Same structure and bf16 casts as the Pallas path, but plain jnp math."""
    return _forward_impl(params, states_nchw, num_actions=num_actions, N=N,
                         linear_fn=_jax_linear, head_fn=_jax_fused_head)


# ----------------------------------------------------------------------------
# Deterministic parameter init (synthetic, He-uniform-style)
# ----------------------------------------------------------------------------
def init_params(key, num_channels, num_actions, N, embedding_dim):
    ks = jax.random.split(key, 8)

    def unif(k, shape, fan_in):
        bound = jnp.sqrt(6.0 / fan_in)
        return jax.random.uniform(k, shape, jnp.float32, -bound, bound)

    return {
        "conv1_w": unif(ks[0], (8, 8, num_channels, 32), 8 * 8 * num_channels),
        "conv1_b": jnp.zeros((32,), jnp.float32),
        "conv2_w": unif(ks[1], (4, 4, 32, 64), 4 * 4 * 32),
        "conv2_b": jnp.zeros((64,), jnp.float32),
        "conv3_w": unif(ks[2], (3, 3, 64, 64), 3 * 3 * 64),
        "conv3_b": jnp.zeros((64,), jnp.float32),
        "fc1_w": unif(ks[3], (embedding_dim, 512), embedding_dim),
        "fc1_b": unif(ks[4], (512,), embedding_dim),
        "fc2_w": unif(ks[5], (512, num_actions * N), 512),
        "fc2_b": unif(ks[6], (num_actions * N,), 512),
    }


# ----------------------------------------------------------------------------
# Pure-f32 JAX reference (true module semantics, loose end-to-end check)
# ----------------------------------------------------------------------------
def reference_forward_f32(params, states_nchw, *, num_actions, N):
    x = jnp.transpose(states_nchw, (0, 2, 3, 1)).astype(jnp.float32)

    def conv(x, w, b, s):
        y = lax.conv_general_dilated(
            x, w, (s, s), "VALID", dimension_numbers=("NHWC", "HWIO", "NHWC")
        )
        return jax.nn.relu(y + b)

    x = conv(x, params["conv1_w"], params["conv1_b"], 4)
    x = conv(x, params["conv2_w"], params["conv2_b"], 2)
    x = conv(x, params["conv3_w"], params["conv3_b"], 1)
    B = x.shape[0]
    emb = x.reshape(B, -1)  # HWC flatten (matches the synthetic-weight convention)
    h = jax.nn.relu(emb @ params["fc1_w"] + params["fc1_b"])
    q = h @ params["fc2_w"] + params["fc2_b"]
    return q.reshape(B, N, num_actions)


if __name__ == "__main__":
    # Small shapes consistent with the module's conv geometry:
    # 48x48 input -> 11x11 -> 4x4 -> 2x2 spatial, embedding_dim = 2*2*64 = 256.
    BATCH = 2
    NUM_CHANNELS = 4
    SPATIAL = 48
    NUM_ACTIONS = 8
    N_QUANT = 16
    EMBEDDING_DIM = 2 * 2 * 64

    key = jax.random.PRNGKey(0)
    k_params, k_states = jax.random.split(key)
    params = init_params(k_params, NUM_CHANNELS, NUM_ACTIONS, N_QUANT, EMBEDDING_DIM)
    states = jax.random.uniform(
        k_states, (BATCH, NUM_CHANNELS, SPATIAL, SPATIAL), jnp.float32
    )

    fwd = jax.jit(
        functools.partial(qrdqn_forward, num_actions=NUM_ACTIONS, N=N_QUANT)
    )
    quantiles = fwd(params, states)
    jax.block_until_ready(quantiles)
    assert quantiles.shape == (BATCH, N_QUANT, NUM_ACTIONS), quantiles.shape

    # 1) precision-matched reference (same bf16 casts / same math structure).
    ref_m = jax.jit(
        functools.partial(reference_forward_matched, num_actions=NUM_ACTIONS, N=N_QUANT)
    )(params, states)
    jax.block_until_ready(ref_m)
    assert jnp.allclose(quantiles, ref_m, rtol=1e-2, atol=1e-2), (
        float(jnp.max(jnp.abs(quantiles - ref_m)))
    )

    # 2) exact f32 module semantics (lax.conv) — loose tolerance covers the
    #    intentional bf16 MXU-input precision.
    ref_f = reference_forward_f32(params, states, num_actions=NUM_ACTIONS, N=N_QUANT)
    jax.block_until_ready(ref_f)
    assert jnp.allclose(quantiles, ref_f, rtol=5e-2, atol=5e-2), (
        float(jnp.max(jnp.abs(quantiles - ref_f)))
    )

    # 3) calculate_q path: quantile mean folded into fc2 (linear, so exact up
    #    to bf16 rounding of the folded weights).
    q = jax.jit(
        functools.partial(qrdqn_calculate_q, num_actions=NUM_ACTIONS, N=N_QUANT)
    )(params, states)
    jax.block_until_ready(q)
    assert q.shape == (BATCH, NUM_ACTIONS), q.shape
    q_ref = quantiles.mean(axis=1)
    assert jnp.allclose(q, q_ref, rtol=5e-2, atol=5e-2), (
        float(jnp.max(jnp.abs(q - q_ref)))
    )

    print("KERNEL_OK")
</pallas_src>

<mosaic_0001>
module attributes {stable_mosaic.version = 11 : i64} {
  func.func @_linear_kernel(%arg0: i32, %arg1: memref<242x256xbf16, #tpu.memory_space<vmem>>, %arg2: memref<256x128xbf16, #tpu.memory_space<vmem>>, %arg3: memref<1x128xf32, #tpu.memory_space<vmem>>, %arg4: memref<242x128xbf16, #tpu.memory_space<vmem>>) attributes {dimension_semantics = [#tpu.dimension_semantics<parallel>], iteration_bounds = array<i64: 1>, scalar_prefetch = 0 : i64, scratch_operands = 0 : i64, tpu.core_type = #tpu.core_type<tc>, window_params = [{transform_indices = @transform_0, window_bounds = array<i64: 242, 256>}, {pipeline_mode = #tpu.pipeline_mode<synchronous>, transform_indices = @transform_1, window_bounds = array<i64: 256, 128>}, {pipeline_mode = #tpu.pipeline_mode<synchronous>, transform_indices = @transform_2, window_bounds = array<i64: 1, 128>}, {transform_indices = @transform_3, window_bounds = array<i64: 242, 128>}]} {
    %c0 = arith.constant 0 : index
    %c0_0 = arith.constant 0 : index
    %0 = vector.load %arg1[%c0, %c0_0] : memref<242x256xbf16, #tpu.memory_space<vmem>>, vector<242x256xbf16>
    %c0_1 = arith.constant 0 : index
    %c0_2 = arith.constant 0 : index
    %1 = vector.load %arg2[%c0_1, %c0_2] : memref<256x128xbf16, #tpu.memory_space<vmem>>, vector<256x128xbf16>
    %cst = arith.constant dense<0.000000e+00> : vector<242x128xf32>
    %2 = tpu.matmul %0, %1, %cst {dimension_numbers = #tpu.dot_dimension_numbers<[1], [0], [0], [1], [0, 0, 1, 1], [], []>} : vector<242x256xbf16>, vector<256x128xbf16>, vector<242x128xf32> -> vector<242x128xf32>
    %c0_3 = arith.constant 0 : index
    %c0_4 = arith.constant 0 : index
    %3 = vector.load %arg3[%c0_3, %c0_4] : memref<1x128xf32, #tpu.memory_space<vmem>>, vector<1x128xf32>
    %4 = vector.broadcast %3 : vector<1x128xf32> to vector<242x128xf32>
    %5 = arith.addf %2, %4 : vector<242x128xf32>
    %cst_5 = arith.constant 0.000000e+00 : f32
    %6 = vector.broadcast %cst_5 : f32 to vector<242x128xf32>
    %7 = arith.maximumf %5, %6 : vector<242x128xf32>
    %8 = arith.truncf %7 : vector<242x128xf32> to vector<242x128xbf16>
    %c0_6 = arith.constant 0 : index
    %c0_7 = arith.constant 0 : index
    %9 = vector.load %arg4[%c0_6, %c0_7] : memref<242x128xbf16, #tpu.memory_space<vmem>>, vector<242x128xbf16>
    tpu.vector_store %arg4[%c0_6, %c0_7], %8 {strides = array<i32>} : memref<242x128xbf16, #tpu.memory_space<vmem>>, vector<242x128xbf16>,
    return
  }
  func.func @transform_0(%arg0: i32) -> (i32, i32) {
    %c0_i32 = arith.constant 0 : i32
    %c0_i32_0 = arith.constant 0 : i32
    return %arg0, %c0_i32 : i32, i32
  }
  func.func @transform_1(%arg0: i32) -> (i32, i32) {
    %c0_i32 = arith.constant 0 : i32
    %c0_i32_0 = arith.constant 0 : i32
    %c0_i32_1 = arith.constant 0 : i32
    return %c0_i32, %c0_i32_0 : i32, i32
  }
  func.func @transform_2(%arg0: i32) -> (i32, i32) {
    %c0_i32 = arith.constant 0 : i32
    %c0_i32_0 = arith.constant 0 : i32
    %c0_i32_1 = arith.constant 0 : i32
    return %c0_i32, %c0_i32_0 : i32, i32
  }
  func.func @transform_3(%arg0: i32) -> (i32, i32) {
    %c0_i32 = arith.constant 0 : i32
    %c0_i32_0 = arith.constant 0 : i32
    return %arg0, %c0_i32 : i32, i32
  }
}

module attributes {stable_mosaic.version = 11 : i64} {
  func.func @_linear_kernel(%arg0: i32, %arg1: memref<32x512xbf16, #tpu.memory_space<vmem>>, %arg2: memref<512x128xbf16, #tpu.memory_space<vmem>>, %arg3: memref<1x128xf32, #tpu.memory_space<vmem>>, %arg4: memref<32x128xbf16, #tpu.memory_space<vmem>>) attributes {dimension_semantics = [#tpu.dimension_semantics<parallel>], iteration_bounds = array<i64: 1>, scalar_prefetch = 0 : i64, scratch_operands = 0 : i64, tpu.core_type = #tpu.core_type<tc>, window_params = [{transform_indices = @transform_0, window_bounds = array<i64: 32, 512>}, {pipeline_mode = #tpu.pipeline_mode<synchronous>, transform_indices = @transform_1, window_bounds = array<i64: 512, 128>}, {pipeline_mode = #tpu.pipeline_mode<synchronous>, transform_indices = @transform_2, window_bounds = array<i64: 1, 128>}, {transform_indices = @transform_3, window_bounds = array<i64: 32, 128>}]} {
    %c0 = arith.constant 0 : index
    %c0_0 = arith.constant 0 : index
    %0 = vector.load %arg1[%c0, %c0_0] : memref<32x512xbf16, #tpu.memory_space<vmem>>, vector<32x512xbf16>
    %c0_1 = arith.constant 0 : index
    %c0_2 = arith.constant 0 : index
    %1 = vector.load %arg2[%c0_1, %c0_2] : memref<512x128xbf16, #tpu.memory_space<vmem>>, vector<512x128xbf16>
    %cst = arith.constant dense<0.000000e+00> : vector<32x128xf32>
    %2 = tpu.matmul %0, %1, %cst {dimension_numbers = #tpu.dot_dimension_numbers<[1], [0], [0], [1], [0, 0, 1, 1], [], []>} : vector<32x512xbf16>, vector<512x128xbf16>, vector<32x128xf32> -> vector<32x128xf32>
    %c0_3 = arith.constant 0 : index
    %c0_4 = arith.constant 0 : index
    %3 = vector.load %arg3[%c0_3, %c0_4] : memref<1x128xf32, #tpu.memory_space<vmem>>, vector<1x128xf32>
    %4 = vector.broadcast %3 : vector<1x128xf32> to vector<32x128xf32>
    %5 = arith.addf %2, %4 : vector<32x128xf32>
    %cst_5 = arith.constant 0.000000e+00 : f32
    %6 = vector.broadcast %cst_5 : f32 to vector<32x128xf32>
    %7 = arith.maximumf %5, %6 : vector<32x128xf32>
    %8 = arith.truncf %7 : vector<32x128xf32> to vector<32x128xbf16>
    %c0_6 = arith.constant 0 : index
    %c0_7 = arith.constant 0 : index
    %9 = vector.load %arg4[%c0_6, %c0_7] : memref<32x128xbf16, #tpu.memory_space<vmem>>, vector<32x128xbf16>
    tpu.vector_store %arg4[%c0_6, %c0_7], %8 {strides = array<i32>} : memref<32x128xbf16, #tpu.memory_space<vmem>>, vector<32x128xbf16>,
    return
  }
  func.func @transform_0(%arg0: i32) -> (i32, i32) {
    %c0_i32 = arith.constant 0 : i32
    %c0_i32_0 = arith.constant 0 : i32
    return %arg0, %c0_i32 : i32, i32
  }
  func.func @transform_1(%arg0: i32) -> (i32, i32) {
    %c0_i32 = arith.constant 0 : i32
    %c0_i32_0 = arith.constant 0 : i32
    %c0_i32_1 = arith.constant 0 : i32
    return %c0_i32, %c0_i32_0 : i32, i32
  }
  func.func @transform_2(%arg0: i32) -> (i32, i32) {
    %c0_i32 = arith.constant 0 : i32
    %c0_i32_0 = arith.constant 0 : i32
    %c0_i32_1 = arith.constant 0 : i32
    return %c0_i32, %c0_i32_0 : i32, i32
  }
  func.func @transform_3(%arg0: i32) -> (i32, i32) {
    %c0_i32 = arith.constant 0 : i32
    %c0_i32_0 = arith.constant 0 : i32
    return %arg0, %c0_i32 : i32, i32
  }
}

module attributes {stable_mosaic.version = 11 : i64} {
  func.func @_fused_head_kernel(%arg0: i32, %arg1: memref<4x2x576xbf16, #tpu.memory_space<vmem>>, %arg2: memref<576x64xbf16, #tpu.memory_space<vmem>>, %arg3: memref<1x64xf32, #tpu.memory_space<vmem>>, %arg4: memref<4x64x512xbf16, #tpu.memory_space<vmem>>, %arg5: memref<1x512xf32, #tpu.memory_space<vmem>>, %arg6: memref<512x128xbf16, #tpu.memory_space<vmem>>, %arg7: memref<1x128xf32, #tpu.memory_space<vmem>>, %arg8: memref<2x128xf32, #tpu.memory_space<vmem>>) attributes {dimension_semantics = [#tpu.dimension_semantics<parallel>], iteration_bounds = array<i64: 1>, scalar_prefetch = 0 : i64, scratch_operands = 0 : i64, tpu.core_type = #tpu.core_type<tc>, window_params = [{transform_indices = @transform_0, window_bounds = array<i64: 4, 2, 576>}, {pipeline_mode = #tpu.pipeline_mode<synchronous>, transform_indices = @transform_1, window_bounds = array<i64: 576, 64>}, {pipeline_mode = #tpu.pipeline_mode<synchronous>, transform_indices = @transform_2, window_bounds = array<i64: 1, 64>}, {pipeline_mode = #tpu.pipeline_mode<synchronous>, transform_indices = @transform_3, window_bounds = array<i64: 4, 64, 512>}, {pipeline_mode = #tpu.pipeline_mode<synchronous>, transform_indices = @transform_4, window_bounds = array<i64: 1, 512>}, {pipeline_mode = #tpu.pipeline_mode<synchronous>, transform_indices = @transform_5, window_bounds = array<i64: 512, 128>}, {pipeline_mode = #tpu.pipeline_mode<synchronous>, transform_indices = @transform_6, window_bounds = array<i64: 1, 128>}, {transform_indices = @transform_7, window_bounds = array<i64: 2, 128>}]} {
    %c0 = arith.constant 0 : index
    %c0_0 = arith.constant 0 : index
    %c0_1 = arith.constant 0 : index
    %0 = vector.load %arg1[%c0, %c0_0, %c0_1] : memref<4x2x576xbf16, #tpu.memory_space<vmem>>, vector<1x2x576xbf16>
    %1 = vector.shape_cast %0 : vector<1x2x576xbf16> to vector<2x576xbf16>
    %c0_2 = arith.constant 0 : index
    %c0_3 = arith.constant 0 : index
    %2 = vector.load %arg2[%c0_2, %c0_3] : memref<576x64xbf16, #tpu.memory_space<vmem>>, vector<576x64xbf16>
    %cst = arith.constant dense<0.000000e+00> : vector<2x64xf32>
    %3 = tpu.matmul %1, %2, %cst {dimension_numbers = #tpu.dot_dimension_numbers<[1], [0], [0], [1], [0, 0, 1, 1], [], []>} : vector<2x576xbf16>, vector<576x64xbf16>, vector<2x64xf32> -> vector<2x64xf32>
    %c0_4 = arith.constant 0 : index
    %c0_5 = arith.constant 0 : index
    %4 = vector.load %arg3[%c0_4, %c0_5] : memref<1x64xf32, #tpu.memory_space<vmem>>, vector<1x64xf32>
    %5 = vector.broadcast %4 : vector<1x64xf32> to vector<2x64xf32>
    %6 = arith.addf %3, %5 : vector<2x64xf32>
    %cst_6 = arith.constant 0.000000e+00 : f32
    %7 = vector.broadcast %cst_6 : f32 to vector<2x64xf32>
    %8 = arith.maximumf %6, %7 : vector<2x64xf32>
    %9 = arith.truncf %8 : vector<2x64xf32> to vector<2x64xbf16>
    %c0_7 = arith.constant 0 : index
    %c0_8 = arith.constant 0 : index
    %c0_9 = arith.constant 0 : index
    %10 = vector.load %arg4[%c0_7, %c0_8, %c0_9] : memref<4x64x512xbf16, #tpu.memory_space<vmem>>, vector<1x64x512xbf16>
    %11 = vector.shape_cast %10 : vector<1x64x512xbf16> to vector<64x512xbf16>
    %cst_10 = arith.constant dense<0.000000e+00> : vector<2x512xf32>
    %12 = tpu.matmul %9, %11, %cst_10 {dimension_numbers = #tpu.dot_dimension_numbers<[1], [0], [0], [1], [0, 0, 1, 1], [], []>} : vector<2x64xbf16>, vector<64x512xbf16>, vector<2x512xf32> -> vector<2x512xf32>
    %c1 = arith.constant 1 : index
    %c0_11 = arith.constant 0 : index
    %c0_12 = arith.constant 0 : index
    %13 = vector.load %arg1[%c1, %c0_11, %c0_12] : memref<4x2x576xbf16, #tpu.memory_space<vmem>>, vector<1x2x576xbf16>
    %14 = vector.shape_cast %13 : vector<1x2x576xbf16> to vector<2x576xbf16>
    %c0_13 = arith.constant 0 : index
    %c0_14 = arith.constant 0 : index
    %15 = vector.load %arg2[%c0_13, %c0_14] : memref<576x64xbf16, #tpu.memory_space<vmem>>, vector<576x64xbf16>
    %cst_15 = arith.constant dense<0.000000e+00> : vector<2x64xf32>
    %16 = tpu.matmul %14, %15, %cst_15 {dimension_numbers = #tpu.dot_dimension_numbers<[1], [0], [0], [1], [0, 0, 1, 1], [], []>} : vector<2x576xbf16>, vector<576x64xbf16>, vector<2x64xf32> -> vector<2x64xf32>
    %c0_16 = arith.constant 0 : index
    %c0_17 = arith.constant 0 : index
    %17 = vector.load %arg3[%c0_16, %c0_17] : memref<1x64xf32, #tpu.memory_space<vmem>>, vector<1x64xf32>
    %18 = vector.broadcast %17 : vector<1x64xf32> to vector<2x64xf32>
    %19 = arith.addf %16, %18 : vector<2x64xf32>
    %cst_18 = arith.constant 0.000000e+00 : f32
    %20 = vector.broadcast %cst_18 : f32 to vector<2x64xf32>
    %21 = arith.maximumf %19, %20 : vector<2x64xf32>
    %22 = arith.truncf %21 : vector<2x64xf32> to vector<2x64xbf16>
    %c1_19 = arith.constant 1 : index
    %c0_20 = arith.constant 0 : index
    %c0_21 = arith.constant 0 : index
    %23 = vector.load %arg4[%c1_19, %c0_20, %c0_21] : memref<4x64x512xbf16, #tpu.memory_space<vmem>>, vector<1x64x512xbf16>
    %24 = vector.shape_cast %23 : vector<1x64x512xbf16> to vector<64x512xbf16>
    %cst_22 = arith.constant dense<0.000000e+00> : vector<2x512xf32>
    %25 = tpu.matmul %22, %24, %cst_22 {dimension_numbers = #tpu.dot_dimension_numbers<[1], [0], [0], [1], [0, 0, 1, 1], [], []>} : vector<2x64xbf16>, vector<64x512xbf16>, vector<2x512xf32> -> vector<2x512xf32>
    %26 = arith.addf %12, %25 : vector<2x512xf32>
    %c2 = arith.constant 2 : index
    %c0_23 = arith.constant 0 : index
    %c0_24 = arith.constant 0 : index
    %27 = vector.load %arg1[%c2, %c0_23, %c0_24] : memref<4x2x576xbf16, #tpu.memory_space<vmem>>, vector<1x2x576xbf16>
    %28 = vector.shape_cast %27 : vector<1x2x576xbf16> to vector<2x576xbf16>
    %c0_25 = arith.constant 0 : index
    %c0_26 = arith.constant 0 : index
    %29 = vector.load %arg2[%c0_25, %c0_26] : memref<576x64xbf16, #tpu.memory_space<vmem>>, vector<576x64xbf16>
    %cst_27 = arith.constant dense<0.000000e+00> : vector<2x64xf32>
    %30 = tpu.matmul %28, %29, %cst_27 {dimension_numbers = #tpu.dot_dimension_numbers<[1], [0], [0], [1], [0, 0, 1, 1], [], []>} : vector<2x576xbf16>, vector<576x64xbf16>, vector<2x64xf32> -> vector<2x64xf32>
    %c0_28 = arith.constant 0 : index
    %c0_29 = arith.constant 0 : index
    %31 = vector.load %arg3[%c0_28, %c0_29] : memref<1x64xf32, #tpu.memory_space<vmem>>, vector<1x64xf32>
    %32 = vector.broadcast %31 : vector<1x64xf32> to vector<2x64xf32>
    %33 = arith.addf %30, %32 : vector<2x64xf32>
    %cst_30 = arith.constant 0.000000e+00 : f32
    %34 = vector.broadcast %cst_30 : f32 to vector<2x64xf32>
    %35 = arith.maximumf %33, %34 : vector<2x64xf32>
    %36 = arith.truncf %35 : vector<2x64xf32> to vector<2x64xbf16>
    %c2_31 = arith.constant 2 : index
    %c0_32 = arith.constant 0 : index
    %c0_33 = arith.constant 0 : index
    %37 = vector.load %arg4[%c2_31, %c0_32, %c0_33] : memref<4x64x512xbf16, #tpu.memory_space<vmem>>, vector<1x64x512xbf16>
    %38 = vector.shape_cast %37 : vector<1x64x512xbf16> to vector<64x512xbf16>
    %cst_34 = arith.constant dense<0.000000e+00> : vector<2x512xf32>
    %39 = tpu.matmul %36, %38, %cst_34 {dimension_numbers = #tpu.dot_dimension_numbers<[1], [0], [0], [1], [0, 0, 1, 1], [], []>} : vector<2x64xbf16>, vector<64x512xbf16>, vector<2x512xf32> -> vector<2x512xf32>
    %40 = arith.addf %26, %39 : vector<2x512xf32>
    %c3 = arith.constant 3 : index
    %c0_35 = arith.constant 0 : index
    %c0_36 = arith.constant 0 : index
    %41 = vector.load %arg1[%c3, %c0_35, %c0_36] : memref<4x2x576xbf16, #tpu.memory_space<vmem>>, vector<1x2x576xbf16>
    %42 = vector.shape_cast %41 : vector<1x2x576xbf16> to vector<2x576xbf16>
    %c0_37 = arith.constant 0 : index
    %c0_38 = arith.constant 0 : index
    %43 = vector.load %arg2[%c0_37, %c0_38] : memref<576x64xbf16, #tpu.memory_space<vmem>>, vector<576x64xbf16>
    %cst_39 = arith.constant dense<0.000000e+00> : vector<2x64xf32>
    %44 = tpu.matmul %42, %43, %cst_39 {dimension_numbers = #tpu.dot_dimension_numbers<[1], [0], [0], [1], [0, 0, 1, 1], [], []>} : vector<2x576xbf16>, vector<576x64xbf16>, vector<2x64xf32> -> vector<2x64xf32>
    %c0_40 = arith.constant 0 : index
    %c0_41 = arith.constant 0 : index
    %45 = vector.load %arg3[%c0_40, %c0_41] : memref<1x64xf32, #tpu.memory_space<vmem>>, vector<1x64xf32>
    %46 = vector.broadcast %45 : vector<1x64xf32> to vector<2x64xf32>
    %47 = arith.addf %44, %46 : vector<2x64xf32>
    %cst_42 = arith.constant 0.000000e+00 : f32
    %48 = vector.broadcast %cst_42 : f32 to vector<2x64xf32>
    %49 = arith.maximumf %47, %48 : vector<2x64xf32>
    %50 = arith.truncf %49 : vector<2x64xf32> to vector<2x64xbf16>
    %c3_43 = arith.constant 3 : index
    %c0_44 = arith.constant 0 : index
    %c0_45 = arith.constant 0 : index
    %51 = vector.load %arg4[%c3_43, %c0_44, %c0_45] : memref<4x64x512xbf16, #tpu.memory_space<vmem>>, vector<1x64x512xbf16>
    %52 = vector.shape_cast %51 : vector<1x64x512xbf16> to vector<64x512xbf16>
    %cst_46 = arith.constant dense<0.000000e+00> : vector<2x512xf32>
    %53 = tpu.matmul %50, %52, %cst_46 {dimension_numbers = #tpu.dot_dimension_numbers<[1], [0], [0], [1], [0, 0, 1, 1], [], []>} : vector<2x64xbf16>, vector<64x512xbf16>, vector<2x512xf32> -> vector<2x512xf32>
    %54 = arith.addf %40, %53 : vector<2x512xf32>
    %c0_47 = arith.constant 0 : index
    %c0_48 = arith.constant 0 : index
    %55 = vector.load %arg5[%c0_47, %c0_48] : memref<1x512xf32, #tpu.memory_space<vmem>>, vector<1x512xf32>
    %56 = vector.broadcast %55 : vector<1x512xf32> to vector<2x512xf32>
    %57 = arith.addf %54, %56 : vector<2x512xf32>
    %cst_49 = arith.constant 0.000000e+00 : f32
    %58 = vector.broadcast %cst_49 : f32 to vector<2x512xf32>
    %59 = arith.maximumf %57, %58 : vector<2x512xf32>
    %60 = arith.truncf %59 : vector<2x512xf32> to vector<2x512xbf16>
    %c0_50 = arith.constant 0 : index
    %c0_51 = arith.constant 0 : index
    %61 = vector.load %arg6[%c0_50, %c0_51] : memref<512x128xbf16, #tpu.memory_space<vmem>>, vector<512x128xbf16>
    %cst_52 = arith.constant dense<0.000000e+00> : vector<2x128xf32>
    %62 = tpu.matmul %60, %61, %cst_52 {dimension_numbers = #tpu.dot_dimension_numbers<[1], [0], [0], [1], [0, 0, 1, 1], [], []>} : vector<2x512xbf16>, vector<512x128xbf16>, vector<2x128xf32> -> vector<2x128xf32>
    %c0_53 = arith.constant 0 : index
    %c0_54 = arith.constant 0 : index
    %63 = vector.load %arg7[%c0_53, %c0_54] : memref<1x128xf32, #tpu.memory_space<vmem>>, vector<1x128xf32>
    %64 = vector.broadcast %63 : vector<1x128xf32> to vector<2x128xf32>
    %65 = arith.addf %62, %64 : vector<2x128xf32>
    %c0_55 = arith.constant 0 : index
    %c0_56 = arith.constant 0 : index
    %66 = vector.load %arg8[%c0_55, %c0_56] : memref<2x128xf32, #tpu.memory_space<vmem>>, vector<2x128xf32>
    tpu.vector_store %arg8[%c0_55, %c0_56], %65 {strides = array<i32>} : memref<2x128xf32, #tpu.memory_space<vmem>>, vector<2x128xf32>,
    return
  }
  func.func @transform_0(%arg0: i32) -> (i32, i32, i32) {
    %c0_i32 = arith.constant 0 : i32
    %c0_i32_0 = arith.constant 0 : i32
    %c0_i32_1 = arith.constant 0 : i32
    return %c0_i32, %arg0, %c0_i32_0 : i32, i32, i32
  }
  func.func @transform_1(%arg0: i32) -> (i32, i32) {
    %c0_i32 = arith.constant 0 : i32
    %c0_i32_0 = arith.constant 0 : i32
    %c0_i32_1 = arith.constant 0 : i32
    return %c0_i32, %c0_i32_0 : i32, i32
  }
  func.func @transform_2(%arg0: i32) -> (i32, i32) {
    %c0_i32 = arith.constant 0 : i32
    %c0_i32_0 = arith.constant 0 : i32
    %c0_i32_1 = arith.constant 0 : i32
    return %c0_i32, %c0_i32_0 : i32, i32
  }
  func.func @transform_3(%arg0: i32) -> (i32, i32, i32) {
    %c0_i32 = arith.constant 0 : i32
    %c0_i32_0 = arith.constant 0 : i32
    %c0_i32_1 = arith.constant 0 : i32
    %c0_i32_2 = arith.constant 0 : i32
    return %c0_i32, %c0_i32_0, %c0_i32_1 : i32, i32, i32
  }
  func.func @transform_4(%arg0: i32) -> (i32, i32) {
    %c0_i32 = arith.constant 0 : i32
    %c0_i32_0 = arith.constant 0 : i32
    %c0_i32_1 = arith.constant 0 : i32
    return %c0_i32, %c0_i32_0 : i32, i32
  }
  func.func @transform_5(%arg0: i32) -> (i32, i32) {
    %c0_i32 = arith.constant 0 : i32
    %c0_i32_0 = arith.constant 0 : i32
    %c0_i32_1 = arith.constant 0 : i32
    return %c0_i32, %c0_i32_0 : i32, i32
  }
  func.func @transform_6(%arg0: i32) -> (i32, i32) {
    %c0_i32 = arith.constant 0 : i32
    %c0_i32_0 = arith.constant 0 : i32
    %c0_i32_1 = arith.constant 0 : i32
    return %c0_i32, %c0_i32_0 : i32, i32
  }
  func.func @transform_7(%arg0: i32) -> (i32, i32) {
    %c0_i32 = arith.constant 0 : i32
    %c0_i32_0 = arith.constant 0 : i32
    return %arg0, %c0_i32 : i32, i32
  }
}

</mosaic_0001>

<bundles_post_ra>
// kernel: qrdqn_forward.3
= control target key start
LH: loop header
LB: loop body
LE: loop exit
PB: predicated region body
PF: predicated region fallthrough
CT: control target
= control target key end

     0   :  { %s1325_s1 = inlined_call_operand.vmem [shape: bf16[256,128], index: 1, kind: input, shape index: {}]   ;;  %s1326_s0 = inlined_call_operand.vmem [shape: bf16[242,256], index: 0, kind: input, shape index: {}]   ;;  %s1327_s2 = inlined_call_operand.vmem [shape: f32[1,128], index: 2, kind: input, shape index: {}]   ;;  %s1328_s3 = inlined_call_operand.vmem [shape: bf16[242,128], index: 3, kind: output, shape index: {}]  }
   0x1   :  { %v1017_v0 = vld [vmem:[%s1325_s1 + $0x78] sm:$0xff]   ;;  %v1019_v2 = vld [vmem:[%s1325_s1 + $0x70] sm:$0xff]   ;;  %v1021_v4 = vld [vmem:[%s1325_s1 + $0x68] sm:$0xff]  }
   0x2   :  { %v1018_v1 = vld [vmem:[%s1325_s1 + $0x38] sm:$0xff]   ;;  %889 = vmatprep.subr.bf16.mxu0 %v1017_v0  ;;  %1001 = vmatprep.subr.bf16.mxu1 %v1017_v0  ;;  %v1020_v3 = vld [vmem:[%s1325_s1 + $0x30] sm:$0xff]   ;;  %v1022_v5 = vld [vmem:[%s1325_s1 + $0x28] sm:$0xff]  }
   0x3   :  { %890 = vmatpush3.bf16.msra.mxu0 %v1018_v1  ;;  %1009 = vmatpush3.bf16.msra.mxu1 %v1018_v1  ;;  %v1023_v6 = vld [vmem:[%s1325_s1 + $0x60] sm:$0xff]   ;;  %v1025_v8 = vld [vmem:[%s1325_s1 + $0x58] sm:$0xff]   ;;  %v1027_v10 = vld [vmem:[%s1325_s1 + $0x50] sm:$0xff]  }
   0x4   :  { %891 = vmatprep.subr.bf16.mxu0 %v1019_v2  ;;  %1002 = vmatprep.subr.bf16.mxu1 %v1019_v2  ;;  %v1024_v7 = vld [vmem:[%s1325_s1 + $0x20] sm:$0xff]   ;;  %v1026_v9 = vld [vmem:[%s1325_s1 + $0x18] sm:$0xff]   ;;  %v1028_v13 = vld [vmem:[%s1325_s1 + $0x10] sm:$0xff]  }
   0x5   :  { %v1035_v11 = vld [vmem:[%s1326_s0 + $0x4] ss:$8 sps:$4 sm:$0xff]   ;;  %v1033_v18 = vld [vmem:[%s1326_s0] ss:$8 sps:$4 sm:$0xff]   ;;  %v1039_v20 = vld [vmem:[%s1326_s0 + $0x14] ss:$8 sps:$4 sm:$0xff]  }
   0x6   :  { %v1038_v12 = vld [vmem:[%s1326_s0 + $0x84] ss:$8 sps:$4 sm:$0xff]   ;;  %370 = vmatprep.mubr.bf16.mxu0 %v1035_v11  ;;  %v1036_v19 = vld [vmem:[%s1326_s0 + $0x80] ss:$8 sps:$4 sm:$0xff]   ;;  %v1041_v21 = vld [vmem:[%s1326_s0 + $0x94] ss:$8 sps:$4 sm:$0xff]  }
   0x7   :  { %892 = vmatpush3.bf16.msra.mxu0 %v1020_v3  ;;  %1010 = vmatpush3.bf16.msra.mxu1 %v1020_v3  ;;  %v1029_v14 = vld [vmem:[%s1325_s1 + $0x48] sm:$0xff]   ;;  %v1031_v16 = vld [vmem:[%s1325_s1 + $0x40] sm:$0xff]   ;;  %v1043_v22 = vld [vmem:[%s1326_s0 + $0x10] ss:$8 sps:$4 sm:$0xff]  }
   0x8   :  { %893 = vmatprep.subr.bf16.mxu0 %v1021_v4  ;;  %1003 = vmatprep.subr.bf16.mxu1 %v1021_v4  ;;  %v1030_v15 = vld [vmem:[%s1325_s1 + $0x8] sm:$0xff]   ;;  %v1032_v17 = vld [vmem:[%s1325_s1] sm:$0xff]   ;;  %v1044_v23 = vld [vmem:[%s1326_s0 + $0x90] ss:$8 sps:$4 sm:$0xff]  }
   0x9   :  { %434 = vmatprep.mubr.bf16.mxu1 %v1038_v12  ;;  %v1045_v24 = vld [vmem:[%s1326_s0 + $0x24] ss:$8 sps:$4 sm:$0xff]   ;;  %v1049_v26 = vld [vmem:[%s1326_s0 + $0x20] ss:$8 sps:$4 sm:$0xff]   ;;  %v1051_v28 = vld [vmem:[%s1326_s0 + $0x34] ss:$8 sps:$4 sm:$0xff]  }
   0xa   :  { %v1047_v25 = vld [vmem:[%s1326_s0 + $0xa4] ss:$8 sps:$4 sm:$0xff]   ;;  %v1050_v27 = vld [vmem:[%s1326_s0 + $0xa0] ss:$8 sps:$4 sm:$0xff]   ;;  %v1053_v29 = vld [vmem:[%s1326_s0 + $0xb4] ss:$8 sps:$4 sm:$0xff]  }
   0xb   :  { %894 = vmatpush3.bf16.msra.mxu0 %v1022_v5  ;;  %1011 = vmatpush3.bf16.msra.mxu1 %v1022_v5  ;;  %v1055_v30 = vld [vmem:[%s1326_s0 + $0x30] ss:$8 sps:$4 sm:$0xff]   ;;  %v1057_v32 = vld [vmem:[%s1326_s0 + $0x44] ss:$8 sps:$4 sm:$0xff]   ;;  %v1061_v34 = vld [vmem:[%s1326_s0 + $0x40] ss:$8 sps:$4 sm:$0xff]  }
   0xc   :  { %895 = vmatprep.subr.bf16.mxu0 %v1023_v6  ;;  %1004 = vmatprep.subr.bf16.mxu1 %v1023_v6  ;;  %v1056_v31 = vld [vmem:[%s1326_s0 + $0xb0] ss:$8 sps:$4 sm:$0xff]   ;;  %v1059_v33 = vld [vmem:[%s1326_s0 + $0xc4] ss:$8 sps:$4 sm:$0xff]   ;;  %v1062_v35 = vld [vmem:[%s1326_s0 + $0xc0] ss:$8 sps:$4 sm:$0xff]  }
   0xd   :  { %v1063_v36 = vld [vmem:[%s1326_s0 + $0x54] ss:$8 sps:$4 sm:$0xff]   ;;  %v1067_v38 = vld [vmem:[%s1326_s0 + $0x50] ss:$8 sps:$4 sm:$0xff]   ;;  %v1069_v40 = vld [vmem:[%s1326_s0 + $0x64] ss:$8 sps:$4 sm:$0xff]  }
   0xe   :  { %v1065_v37 = vld [vmem:[%s1326_s0 + $0xd4] ss:$8 sps:$4 sm:$0xff]   ;;  %v1068_v39 = vld [vmem:[%s1326_s0 + $0xd0] ss:$8 sps:$4 sm:$0xff]   ;;  %v1071_v41 = vld [vmem:[%s1326_s0 + $0xe4] ss:$8 sps:$4 sm:$0xff]  }
   0xf   :  { %896 = vmatpush3.bf16.msra.mxu0 %v1024_v7  ;;  %1012 = vmatpush3.bf16.msra.mxu1 %v1024_v7  ;;  %v45_v42 = vld [vmem:[%s1326_s0 + $0xf0] sm:$0x11]  ;;  %v1073_v43 = vld [vmem:[%s1326_s0 + $0x60] ss:$8 sps:$4 sm:$0xff]  }
  0x10   :  { %897 = vmatprep.subr.bf16.mxu0 %v1025_v8  ;;  %1005 = vmatprep.subr.bf16.mxu1 %v1025_v8  ;;  %v1074_v44 = vld [vmem:[%s1326_s0 + $0xe0] ss:$8 sps:$4 sm:$0xff]   ;;  %v1075_v45 = vld [vmem:[%s1326_s0 + $0x74] ss:$8 sps:$4 sm:$0xff]   ;;  %v721_v46 = vcombine.high %v45_v42, %v45_v42  ;;  %v1078_v47 = vld [vmem:[%s1326_s0 + $0x70] ss:$8 sps:$4 sm:$0xff]   ;;  %v720_v48 = vcombine.low %v45_v42, %v45_v42 }
  0x11   :  { %v1244_v53 = vld [vmem:[%s1327_s2] ss:$0 sm:$0xff] }
  0x13   :  { %898 = vmatpush3.bf16.msra.mxu0 %v1026_v9  ;;  %1013 = vmatpush3.bf16.msra.mxu1 %v1026_v9 }
  0x14   :  { %899 = vmatprep.subr.bf16.mxu0 %v1027_v10  ;;  %1006 = vmatprep.subr.bf16.mxu1 %v1027_v10 }
  0x17   :  { %900 = vmatpush3.bf16.msra.mxu0 %v1028_v13  ;;  %1014 = vmatpush3.bf16.msra.mxu1 %v1028_v13 }
  0x18   :  { %901 = vmatprep.subr.bf16.mxu0 %v1029_v14  ;;  %1007 = vmatprep.subr.bf16.mxu1 %v1029_v14 }
  0x1b   :  { %902 = vmatpush3.bf16.msra.mxu0 %v1030_v15  ;;  %1015 = vmatpush3.bf16.msra.mxu1 %v1030_v15 }
  0x1c   :  { %903 = vmatprep.subr.bf16.mxu0 %v1031_v16  ;;  %1008 = vmatprep.subr.bf16.mxu1 %v1031_v16 }
  0x1f   :  { %904 = vmatpush3.bf16.msra.mxu0 %v1032_v17  ;;  %1016 = vmatpush3.bf16.msra.mxu1 %v1032_v17 }
  0x22   :  { %371 = vmatmul.mubr.bf16.vlgmr.msra.gmra.mxu0 %v1033_v18  ;;  %435 = vmatmul.mubr.bf16.vlgmr.msra.gmra.mxu1 %v1036_v19 }
  0x23   :  { %378 = vmatprep.mubr.bf16.mxu0 %v1039_v20  ;;  %442 = vmatprep.mubr.bf16.mxu1 %v1041_v21 }
  0x2a   :  { %379 = vmatmul.mubr.bf16.gmra.mxu0 %v1043_v22  ;;  %443 = vmatmul.mubr.bf16.gmra.mxu1 %v1044_v23 }
  0x2b   :  { %386 = vmatprep.mubr.bf16.mxu0 %v1045_v24  ;;  %450 = vmatprep.mubr.bf16.mxu1 %v1047_v25 }
  0x32   :  { %387 = vmatmul.mubr.bf16.gmra.mxu0 %v1049_v26  ;;  %451 = vmatmul.mubr.bf16.gmra.mxu1 %v1050_v27 }
  0x33   :  { %394 = vmatprep.mubr.bf16.mxu0 %v1051_v28  ;;  %458 = vmatprep.mubr.bf16.mxu1 %v1053_v29 }
  0x3a   :  { %395 = vmatmul.mubr.bf16.gmra.mxu0 %v1055_v30  ;;  %459 = vmatmul.mubr.bf16.gmra.mxu1 %v1056_v31 }
  0x3b   :  { %402 = vmatprep.mubr.bf16.mxu0 %v1057_v32  ;;  %466 = vmatprep.mubr.bf16.mxu1 %v1059_v33 }
  0x42   :  { %403 = vmatmul.mubr.bf16.gmra.mxu0 %v1061_v34  ;;  %467 = vmatmul.mubr.bf16.gmra.mxu1 %v1062_v35 }
  0x43   :  { %410 = vmatprep.mubr.bf16.mxu0 %v1063_v36  ;;  %474 = vmatprep.mubr.bf16.mxu1 %v1065_v37 }
  0x4a   :  { %411 = vmatmul.mubr.bf16.gmra.mxu0 %v1067_v38  ;;  %475 = vmatmul.mubr.bf16.gmra.mxu1 %v1068_v39 }
  0x4b   :  { %418 = vmatprep.mubr.bf16.mxu0 %v1069_v40  ;;  %482 = vmatprep.mubr.bf16.mxu1 %v1071_v41 }
  0x52   :  { %419 = vmatmul.mubr.bf16.gmra.mxu0 %v1073_v43  ;;  %483 = vmatmul.mubr.bf16.gmra.mxu1 %v1074_v44 }
  0x53   :  { %426 = vmatprep.mubr.bf16.mxu0 %v1075_v45  ;;  %490 = vmatprep.mubr.bf16.mxu1 %v721_v46 }
  0x5a   :  { %427 = vmatmul.mubr.bf16.gmra.mxu0 %v1078_v47  ;;  %491 = vmatmul.mubr.bf16.gmra.mxu1 %v720_v48 }
  0xe2   :  { %v905_v49 = vpop.f32.mrf.mxu0  ;;  %v953_v50 = vpop.f32.mrf.mxu1 }
  0xe4   :  { %v906_v51 = vpop.f32.mrf.mxu0  ;;  %v954_v52 = vpop.f32.mrf.mxu1 }
  0xe5   :  { %v907_v54 = vadd.f32 %v906_v51, %v905_v49  ;;  %v955_v55 = vadd.f32 %v954_v52, %v953_v50 }
  0xe6   :  { %v908_v56 = vpop.f32.mrf.mxu0  ;;  %v956_v57 = vpop.f32.mrf.mxu1 }
  0xe7   :  { %v373_v58 = vadd.f32 %v907_v54, %v1244_v53  ;;  %v437_v59 = vadd.f32 %v955_v55, %v1244_v53 }
  0xe8   :  { %v909_v60 = vpop.f32.mrf.mxu0  ;;  %v957_v61 = vpop.f32.mrf.mxu1 }
  0xe9   :  { %v910_v62 = vadd.f32 %v909_v60, %v908_v56  ;;  %v958_v63 = vadd.f32 %v957_v61, %v956_v57  ;;  %v498_v4 = vmax.f32 %v373_v58, 0.0  ;;  %v514_v5 = vmax.f32 %v437_v59, 0.0 }
  0xea   :  { %v911_v0 = vpop.f32.mrf.mxu0  ;;  %v959_v1 = vpop.f32.mrf.mxu1 }
  0xeb   :  { %v376_v2 = vadd.f32 %v910_v62, %v1244_v53  ;;  %v440_v3 = vadd.f32 %v958_v63, %v1244_v53 }
  0xec   :  { %v912_v6 = vpop.f32.mrf.mxu0  ;;  %v960_v7 = vpop.f32.mrf.mxu1 }
  0xed   :  { %v499_v8 = vmax.f32 %v376_v2, 0.0  ;;  %v515_v9 = vmax.f32 %v440_v3, 0.0  ;;  %v913_v10 = vadd.f32 %v912_v6, %v911_v0  ;;  %v961_v11 = vadd.f32 %v960_v7, %v959_v1 }
  0xee   :  { %v914_v12 = vpop.f32.mrf.mxu0  ;;  %v962_v13 = vpop.f32.mrf.mxu1 }
  0xef   :  { %v803_v14 = vpack.c.bf16 %v499_v8, %v498_v4  ;;  %v843_v15 = vpack.c.bf16 %v515_v9, %v514_v5  ;;  %v381_v16 = vadd.f32 %v913_v10, %v1244_v53  ;;  %v445_v17 = vadd.f32 %v961_v11, %v1244_v53 }
  0xf0   :  { %v915_v18 = vpop.f32.mrf.mxu0  ;;  %v963_v19 = vpop.f32.mrf.mxu1 }
  0xf1   :  { %804 = vst [vmem:[%s1328_s3] sm:$0xff] %v803_v14   ;;  %882 = vst [vmem:[%s1328_s3 + $0x40] sm:$0xff] %v843_v15   ;;  %v916_v20 = vadd.f32 %v915_v18, %v914_v12  ;;  %v964_v21 = vadd.f32 %v963_v19, %v962_v13  ;;  %v500_v26 = vmax.f32 %v381_v16, 0.0  ;;  %v516_v27 = vmax.f32 %v445_v17, 0.0 }
  0xf2   :  { %v917_v22 = vpop.f32.mrf.mxu0  ;;  %v965_v23 = vpop.f32.mrf.mxu1 }
  0xf3   :  { %v384_v24 = vadd.f32 %v916_v20, %v1244_v53  ;;  %v448_v25 = vadd.f32 %v964_v21, %v1244_v53 }
  0xf4   :  { %v918_v28 = vpop.f32.mrf.mxu0  ;;  %v966_v29 = vpop.f32.mrf.mxu1 }
  0xf5   :  { %v501_v30 = vmax.f32 %v384_v24, 0.0  ;;  %v517_v31 = vmax.f32 %v448_v25, 0.0  ;;  %v919_v32 = vadd.f32 %v918_v28, %v917_v22  ;;  %v967_v33 = vadd.f32 %v966_v29, %v965_v23 }
  0xf6   :  { %v920_v34 = vpop.f32.mrf.mxu0  ;;  %v968_v35 = vpop.f32.mrf.mxu1 }
  0xf7   :  { %v808_v36 = vpack.c.bf16 %v501_v30, %v500_v26  ;;  %v848_v37 = vpack.c.bf16 %v517_v31, %v516_v27  ;;  %v389_v38 = vadd.f32 %v919_v32, %v1244_v53  ;;  %v453_v39 = vadd.f32 %v967_v33, %v1244_v53 }
  0xf8   :  { %v921_v40 = vpop.f32.mrf.mxu0  ;;  %v969_v41 = vpop.f32.mrf.mxu1 }
  0xf9   :  { %875 = vst [vmem:[%s1328_s3 + $0x8] sm:$0xff] %v808_v36   ;;  %883 = vst [vmem:[%s1328_s3 + $0x48] sm:$0xff] %v848_v37   ;;  %v922_v42 = vadd.f32 %v921_v40, %v920_v34  ;;  %v970_v43 = vadd.f32 %v969_v41, %v968_v35  ;;  %v502_v48 = vmax.f32 %v389_v38, 0.0  ;;  %v518_v49 = vmax.f32 %v453_v39, 0.0 }
  0xfa   :  { %v923_v44 = vpop.f32.mrf.mxu0  ;;  %v971_v45 = vpop.f32.mrf.mxu1 }
  0xfb   :  { %v392_v46 = vadd.f32 %v922_v42, %v1244_v53  ;;  %v456_v47 = vadd.f32 %v970_v43, %v1244_v53 }
  0xfc   :  { %v924_v50 = vpop.f32.mrf.mxu0  ;;  %v972_v51 = vpop.f32.mrf.mxu1 }
  0xfd   :  { %v503_v52 = vmax.f32 %v392_v46, 0.0  ;;  %v519_v54 = vmax.f32 %v456_v47, 0.0  ;;  %v925_v55 = vadd.f32 %v924_v50, %v923_v44  ;;  %v973_v56 = vadd.f32 %v972_v51, %v971_v45 }
  0xfe   :  { %v926_v57 = vpop.f32.mrf.mxu0  ;;  %v974_v58 = vpop.f32.mrf.mxu1 }
  0xff   :  { %v813_v59 = vpack.c.bf16 %v503_v52, %v502_v48  ;;  %v853_v60 = vpack.c.bf16 %v519_v54, %v518_v49  ;;  %v397_v61 = vadd.f32 %v925_v55, %v1244_v53  ;;  %v461_v62 = vadd.f32 %v973_v56, %v1244_v53 }
 0x100   :  { %v927_v63 = vpop.f32.mrf.mxu0  ;;  %v975_v0 = vpop.f32.mrf.mxu1 }
 0x101   :  { %876 = vst [vmem:[%s1328_s3 + $0x10] sm:$0xff] %v813_v59   ;;  %884 = vst [vmem:[%s1328_s3 + $0x50] sm:$0xff] %v853_v60   ;;  %v928_v1 = vadd.f32 %v927_v63, %v926_v57  ;;  %v976_v2 = vadd.f32 %v975_v0, %v974_v58  ;;  %v504_v7 = vmax.f32 %v397_v61, 0.0  ;;  %v520_v8 = vmax.f32 %v461_v62, 0.0 }
 0x102   :  { %v929_v3 = vpop.f32.mrf.mxu0  ;;  %v977_v4 = vpop.f32.mrf.mxu1 }
 0x103   :  { %v400_v5 = vadd.f32 %v928_v1, %v1244_v53  ;;  %v464_v6 = vadd.f32 %v976_v2, %v1244_v53 }
 0x104   :  { %v930_v9 = vpop.f32.mrf.mxu0  ;;  %v978_v10 = vpop.f32.mrf.mxu1 }
 0x105   :  { %v505_v11 = vmax.f32 %v400_v5, 0.0  ;;  %v521_v12 = vmax.f32 %v464_v6, 0.0  ;;  %v931_v13 = vadd.f32 %v930_v9, %v929_v3  ;;  %v979_v14 = vadd.f32 %v978_v10, %v977_v4 }
 0x106   :  { %v932_v15 = vpop.f32.mrf.mxu0  ;;  %v980_v16 = vpop.f32.mrf.mxu1 }
 0x107   :  { %v818_v17 = vpack.c.bf16 %v505_v11, %v504_v7  ;;  %v858_v18 = vpack.c.bf16 %v521_v12, %v520_v8  ;;  %v405_v19 = vadd.f32 %v931_v13, %v1244_v53  ;;  %v469_v20 = vadd.f32 %v979_v14, %v1244_v53 }
 0x108   :  { %v933_v21 = vpop.f32.mrf.mxu0  ;;  %v981_v22 = vpop.f32.mrf.mxu1 }
 0x109   :  { %877 = vst [vmem:[%s1328_s3 + $0x18] sm:$0xff] %v818_v17   ;;  %885 = vst [vmem:[%s1328_s3 + $0x58] sm:$0xff] %v858_v18   ;;  %v934_v23 = vadd.f32 %v933_v21, %v932_v15  ;;  %v982_v24 = vadd.f32 %v981_v22, %v980_v16  ;;  %v506_v29 = vmax.f32 %v405_v19, 0.0  ;;  %v522_v30 = vmax.f32 %v469_v20, 0.0 }
 0x10a   :  { %v935_v25 = vpop.f32.mrf.mxu0  ;;  %v983_v26 = vpop.f32.mrf.mxu1 }
 0x10b   :  { %v408_v27 = vadd.f32 %v934_v23, %v1244_v53  ;;  %v472_v28 = vadd.f32 %v982_v24, %v1244_v53 }
 0x10c   :  { %v936_v31 = vpop.f32.mrf.mxu0  ;;  %v984_v32 = vpop.f32.mrf.mxu1 }
 0x10d   :  { %v507_v33 = vmax.f32 %v408_v27, 0.0  ;;  %v523_v34 = vmax.f32 %v472_v28, 0.0  ;;  %v937_v35 = vadd.f32 %v936_v31, %v935_v25  ;;  %v985_v36 = vadd.f32 %v984_v32, %v983_v26 }
 0x10e   :  { %v938_v37 = vpop.f32.mrf.mxu0  ;;  %v986_v38 = vpop.f32.mrf.mxu1 }
 0x10f   :  { %v823_v39 = vpack.c.bf16 %v507_v33, %v506_v29  ;;  %v863_v40 = vpack.c.bf16 %v523_v34, %v522_v30  ;;  %v413_v41 = vadd.f32 %v937_v35, %v1244_v53  ;;  %v477_v42 = vadd.f32 %v985_v36, %v1244_v53 }
 0x110   :  { %v939_v43 = vpop.f32.mrf.mxu0  ;;  %v987_v44 = vpop.f32.mrf.mxu1 }
 0x111   :  { %878 = vst [vmem:[%s1328_s3 + $0x20] sm:$0xff] %v823_v39   ;;  %886 = vst [vmem:[%s1328_s3 + $0x60] sm:$0xff] %v863_v40   ;;  %v940_v45 = vadd.f32 %v939_v43, %v938_v37  ;;  %v988_v46 = vadd.f32 %v987_v44, %v986_v38  ;;  %v508_v51 = vmax.f32 %v413_v41, 0.0  ;;  %v524_v52 = vmax.f32 %v477_v42, 0.0 }
 0x112   :  { %v941_v47 = vpop.f32.mrf.mxu0  ;;  %v989_v48 = vpop.f32.mrf.mxu1 }
 0x113   :  { %v416_v49 = vadd.f32 %v940_v45, %v1244_v53  ;;  %v480_v50 = vadd.f32 %v988_v46, %v1244_v53 }
 0x114   :  { %v942_v54 = vpop.f32.mrf.mxu0  ;;  %v990_v55 = vpop.f32.mrf.mxu1 }
 0x115   :  { %v509_v56 = vmax.f32 %v416_v49, 0.0  ;;  %v525_v57 = vmax.f32 %v480_v50, 0.0  ;;  %v943_v58 = vadd.f32 %v942_v54, %v941_v47  ;;  %v991_v59 = vadd.f32 %v990_v55, %v989_v48 }
 0x116   :  { %v944_v60 = vpop.f32.mrf.mxu0  ;;  %v992_v61 = vpop.f32.mrf.mxu1 }
 0x117   :  { %v828_v62 = vpack.c.bf16 %v509_v56, %v508_v51  ;;  %v868_v63 = vpack.c.bf16 %v525_v57, %v524_v52  ;;  %v421_v0 = vadd.f32 %v943_v58, %v1244_v53  ;;  %v485_v1 = vadd.f32 %v991_v59, %v1244_v53 }
 0x118   :  { %v945_v2 = vpop.f32.mrf.mxu0  ;;  %v993_v3 = vpop.f32.mrf.mxu1 }
 0x119   :  { %879 = vst [vmem:[%s1328_s3 + $0x28] sm:$0xff] %v828_v62   ;;  %887 = vst [vmem:[%s1328_s3 + $0x68] sm:$0xff] %v868_v63   ;;  %v946_v4 = vadd.f32 %v945_v2, %v944_v60  ;;  %v994_v5 = vadd.f32 %v993_v3, %v992_v61  ;;  %v510_v10 = vmax.f32 %v421_v0, 0.0  ;;  %v526_v11 = vmax.f32 %v485_v1, 0.0 }
 0x11a   :  { %v947_v6 = vpop.f32.mrf.mxu0  ;;  %v995_v7 = vpop.f32.mrf.mxu1 }
 0x11b   :  { %v424_v8 = vadd.f32 %v946_v4, %v1244_v53  ;;  %v488_v9 = vadd.f32 %v994_v5, %v1244_v53 }
 0x11c   :  { %v948_v12 = vpop.f32.mrf.mxu0  ;;  %v996_v13 = vpop.f32.mrf.mxu1 }
 0x11d   :  { %v511_v14 = vmax.f32 %v424_v8, 0.0  ;;  %v527_v15 = vmax.f32 %v488_v9, 0.0  ;;  %v949_v16 = vadd.f32 %v948_v12, %v947_v6  ;;  %v997_v17 = vadd.f32 %v996_v13, %v995_v7 }
 0x11e   :  { %v950_v18 = vpop.f32.mrf.mxu0  ;;  %v998_v19 = vpop.f32.mrf.mxu1 }
 0x11f   :  { %v833_v20 = vpack.c.bf16 %v511_v14, %v510_v10  ;;  %v873_v21 = vpack.c.bf16 %v527_v15, %v526_v11  ;;  %v493_v22 = vadd.f32 %v997_v17, %v1244_v53  ;;  %v429_v25 = vadd.f32 %v949_v16, %v1244_v53 }
 0x120   :  { %v951_v23 = vpop.f32.mrf.mxu0  ;;  %v999_v24 = vpop.f32.mrf.mxu1 }
 0x121   :  { %880 = vst [vmem:[%s1328_s3 + $0x30] sm:$0xff] %v833_v20   ;;  %888 = vst [vmem:[%s1328_s3 + $0x70] sm:$0xff] %v873_v21   ;;  %v528_v26 = vmax.f32 %v493_v22, 0.0  ;;  %v952_v27 = vadd.f32 %v951_v23, %v950_v18  ;;  %v512_v30 = vmax.f32 %v429_v25, 0.0 }
 0x123   :  { %v799_v28 = vpack.c.bf16 %v528_v26, %v528_v26  ;;  %v432_v29 = vadd.f32 %v952_v27, %v1244_v53 }
 0x125   :  { %684 = vst [vmem:[%s1328_s3 + $0x78] sm:$0x1] %v799_v28  ;;  %v513_v31 = vmax.f32 %v432_v29, 0.0 }
 0x127   :  { %v838_v32 = vpack.c.bf16 %v513_v31, %v512_v30 }
 0x129   :  { %881 = vst [vmem:[%s1328_s3 + $0x38] sm:$0xff] %v838_v32  }

// kernel: qrdqn_forward.4
= control target key start
LH: loop header
LB: loop body
LE: loop exit
PB: predicated region body
PF: predicated region fallthrough
CT: control target
= control target key end

     0   :  { %s761_s1 = inlined_call_operand.vmem [shape: bf16[512,128], index: 1, kind: input, shape index: {}]   ;;  %s762_s0 = inlined_call_operand.vmem [shape: bf16[32,512], index: 0, kind: input, shape index: {}]   ;;  %s763_s2 = inlined_call_operand.vmem [shape: f32[1,128], index: 2, kind: input, shape index: {}]   ;;  %s764_s3 = inlined_call_operand.vmem [shape: bf16[32,128], index: 3, kind: output, shape index: {}]  }
   0x1   :  { %v568_v0 = vld [vmem:[%s761_s1 + $0x78] sm:$0xff]   ;;  %v572_v4 = vld [vmem:[%s761_s1 + $0x70] sm:$0xff]   ;;  %v576_v8 = vld [vmem:[%s761_s1 + $0x68] sm:$0xff]  }
   0x2   :  { %v569_v1 = vld [vmem:[%s761_s1 + $0xf8] sm:$0xff]   ;;  %512 = vmatprep.subr.bf16.mxu0 %v568_v0  ;;  %v573_v5 = vld [vmem:[%s761_s1 + $0xf0] sm:$0xff]   ;;  %v577_v9 = vld [vmem:[%s761_s1 + $0xe8] sm:$0xff]  }
   0x3   :  { %v570_v2 = vld [vmem:[%s761_s1 + $0x38] sm:$0xff]   ;;  %540 = vmatprep.subr.bf16.mxu1 %v569_v1  ;;  %v574_v6 = vld [vmem:[%s761_s1 + $0x30] sm:$0xff]   ;;  %v578_v10 = vld [vmem:[%s761_s1 + $0x28] sm:$0xff]  }
   0x4   :  { %v571_v3 = vld [vmem:[%s761_s1 + $0xb8] sm:$0xff]   ;;  %513 = vmatpush3.bf16.msra.mxu0 %v570_v2  ;;  %v575_v7 = vld [vmem:[%s761_s1 + $0xb0] sm:$0xff]   ;;  %v579_v11 = vld [vmem:[%s761_s1 + $0xa8] sm:$0xff]  }
   0x5   :  { %541 = vmatpush3.bf16.msra.mxu1 %v571_v3  ;;  %514 = vmatprep.subr.bf16.mxu0 %v572_v4  ;;  %v580_v12 = vld [vmem:[%s761_s1 + $0x60] sm:$0xff]   ;;  %v584_v16 = vld [vmem:[%s761_s1 + $0x58] sm:$0xff]   ;;  %v588_v20 = vld [vmem:[%s761_s1 + $0x50] sm:$0xff]  }
   0x6   :  { %542 = vmatprep.subr.bf16.mxu1 %v573_v5  ;;  %v581_v13 = vld [vmem:[%s761_s1 + $0xe0] sm:$0xff]   ;;  %v585_v17 = vld [vmem:[%s761_s1 + $0xd8] sm:$0xff]   ;;  %v589_v21 = vld [vmem:[%s761_s1 + $0xd0] sm:$0xff]  }
   0x7   :  { %v582_v14 = vld [vmem:[%s761_s1 + $0x20] sm:$0xff]   ;;  %v586_v18 = vld [vmem:[%s761_s1 + $0x18] sm:$0xff]   ;;  %v590_v22 = vld [vmem:[%s761_s1 + $0x10] sm:$0xff]  }
   0x8   :  { %515 = vmatpush3.bf16.msra.mxu0 %v574_v6  ;;  %v583_v15 = vld [vmem:[%s761_s1 + $0xa0] sm:$0xff]   ;;  %v587_v19 = vld [vmem:[%s761_s1 + $0x98] sm:$0xff]   ;;  %v591_v23 = vld [vmem:[%s761_s1 + $0x90] sm:$0xff]  }
   0x9   :  { %543 = vmatpush3.bf16.msra.mxu1 %v575_v7  ;;  %516 = vmatprep.subr.bf16.mxu0 %v576_v8  ;;  %v592_v24 = vld [vmem:[%s761_s1 + $0x48] sm:$0xff]   ;;  %v596_v28 = vld [vmem:[%s761_s1 + $0x40] sm:$0xff]  }
   0xa   :  { %544 = vmatprep.subr.bf16.mxu1 %v577_v9  ;;  %v593_v25 = vld [vmem:[%s761_s1 + $0xc8] sm:$0xff]   ;;  %v597_v29 = vld [vmem:[%s761_s1 + $0xc0] sm:$0xff]  }
   0xb   :  { %v594_v26 = vld [vmem:[%s761_s1 + $0x8] sm:$0xff]   ;;  %v598_v30 = vld [vmem:[%s761_s1] sm:$0xff]  }
   0xc   :  { %517 = vmatpush3.bf16.msra.mxu0 %v578_v10  ;;  %v595_v27 = vld [vmem:[%s761_s1 + $0x88] sm:$0xff]   ;;  %v599_v31 = vld [vmem:[%s761_s1 + $0x80] sm:$0xff]  }
   0xd   :  { %545 = vmatpush3.bf16.msra.mxu1 %v579_v11  ;;  %518 = vmatprep.subr.bf16.mxu0 %v580_v12  ;;  %v600_v32 = vld [vmem:[%s762_s0] ss:$16 sps:$4 sm:$0xff]   ;;  %v602_v33 = vld [vmem:[%s762_s0 + $0x4] ss:$16 sps:$4 sm:$0xff]   ;;  %v603_v34 = vld [vmem:[%s762_s0 + $0x8] ss:$16 sps:$4 sm:$0xff]  }
   0xe   :  { %546 = vmatprep.subr.bf16.mxu1 %v581_v13  ;;  %v605_v35 = vld [vmem:[%s762_s0 + $0xc] ss:$16 sps:$4 sm:$0xff]   ;;  %358 = vmatprep.mubr.bf16.mxu0 %v602_v33  ;;  %v606_v36 = vld [vmem:[%s762_s0 + $0x24] ss:$16 sps:$4 sm:$0xff]   ;;  %v610_v38 = vld [vmem:[%s762_s0 + $0x20] ss:$16 sps:$4 sm:$0xff]  }
   0xf   :  { %407 = vmatprep.mubr.bf16.mxu1 %v605_v35  ;;  %v608_v37 = vld [vmem:[%s762_s0 + $0x2c] ss:$16 sps:$4 sm:$0xff]   ;;  %v611_v39 = vld [vmem:[%s762_s0 + $0x28] ss:$16 sps:$4 sm:$0xff]   ;;  %v452_v42 = vld [vmem:[%s763_s2] ss:$0 sm:$0xff] }
  0x10   :  { %519 = vmatpush3.bf16.msra.mxu0 %v582_v14 }
  0x11   :  { %547 = vmatpush3.bf16.msra.mxu1 %v583_v15  ;;  %520 = vmatprep.subr.bf16.mxu0 %v584_v16 }
  0x12   :  { %548 = vmatprep.subr.bf16.mxu1 %v585_v17 }
  0x14   :  { %521 = vmatpush3.bf16.msra.mxu0 %v586_v18 }
  0x15   :  { %549 = vmatpush3.bf16.msra.mxu1 %v587_v19  ;;  %522 = vmatprep.subr.bf16.mxu0 %v588_v20 }
  0x16   :  { %550 = vmatprep.subr.bf16.mxu1 %v589_v21 }
  0x18   :  { %523 = vmatpush3.bf16.msra.mxu0 %v590_v22 }
  0x19   :  { %551 = vmatpush3.bf16.msra.mxu1 %v591_v23  ;;  %524 = vmatprep.subr.bf16.mxu0 %v592_v24 }
  0x1a   :  { %552 = vmatprep.subr.bf16.mxu1 %v593_v25 }
  0x1c   :  { %525 = vmatpush3.bf16.msra.mxu0 %v594_v26 }
  0x1d   :  { %553 = vmatpush3.bf16.msra.mxu1 %v595_v27  ;;  %526 = vmatprep.subr.bf16.mxu0 %v596_v28 }
  0x1e   :  { %554 = vmatprep.subr.bf16.mxu1 %v597_v29 }
  0x20   :  { %527 = vmatpush3.bf16.msra.mxu0 %v598_v30 }
  0x21   :  { %555 = vmatpush3.bf16.msra.mxu1 %v599_v31 }
  0x23   :  { %359 = vmatmul.mubr.bf16.vlgmr.msra.gmra.mxu0 %v600_v32 }
  0x24   :  { %408 = vmatmul.mubr.bf16.vlgmr.msra.gmra.mxu1 %v603_v34  ;;  %366 = vmatprep.mubr.bf16.mxu0 %v606_v36 }
  0x25   :  { %415 = vmatprep.mubr.bf16.mxu1 %v608_v37 }
  0x2b   :  { %367 = vmatmul.mubr.bf16.gmra.mxu0 %v610_v38 }
  0x2c   :  { %416 = vmatmul.mubr.bf16.gmra.mxu1 %v611_v39 }
  0xe3   :  { %v528_v40 = vpop.f32.mrf.mxu0 }
  0xe4   :  { %v556_v41 = vpop.f32.mrf.mxu1 }
  0xe5   :  { %v529_v43 = vpop.f32.mrf.mxu0 }
  0xe6   :  { %v530_v44 = vadd.f32 %v529_v43, %v528_v40  ;;  %v557_v45 = vpop.f32.mrf.mxu1 }
  0xe7   :  { %v531_v46 = vpop.f32.mrf.mxu0  ;;  %v558_v50 = vadd.f32 %v557_v45, %v556_v41 }
  0xe8   :  { %v361_v47 = vadd.f32 %v530_v44, %v452_v42  ;;  %v559_v48 = vpop.f32.mrf.mxu1 }
  0xe9   :  { %v532_v49 = vpop.f32.mrf.mxu0 }
  0xea   :  { %v533_v51 = vadd.f32 %v532_v49, %v531_v46  ;;  %v560_v52 = vpop.f32.mrf.mxu1  ;;  %v410_v54 = vadd.f32 %v558_v50, %v361_v47 }
  0xeb   :  { %v534_v53 = vpop.f32.mrf.mxu0  ;;  %v561_v56 = vadd.f32 %v560_v52, %v559_v48 }
  0xec   :  { %v364_v55 = vadd.f32 %v533_v51, %v452_v42  ;;  %v562_v57 = vpop.f32.mrf.mxu1  ;;  %v424_v63 = vmax.f32 %v410_v54, 0.0 }
  0xed   :  { %v535_v58 = vpop.f32.mrf.mxu0 }
  0xee   :  { %v413_v59 = vadd.f32 %v561_v56, %v364_v55  ;;  %v536_v60 = vadd.f32 %v535_v58, %v534_v53  ;;  %v563_v61 = vpop.f32.mrf.mxu1 }
  0xef   :  { %v537_v62 = vpop.f32.mrf.mxu0  ;;  %v564_v5 = vadd.f32 %v563_v61, %v562_v57 }
  0xf0   :  { %v425_v0 = vmax.f32 %v413_v59, 0.0  ;;  %v369_v1 = vadd.f32 %v536_v60, %v452_v42  ;;  %v565_v2 = vpop.f32.mrf.mxu1 }
  0xf1   :  { %v538_v3 = vpop.f32.mrf.mxu0 }
  0xf2   :  { %v504_v4 = vpack.c.bf16 %v425_v0, %v424_v63  ;;  %v539_v6 = vadd.f32 %v538_v3, %v537_v62  ;;  %v566_v7 = vpop.f32.mrf.mxu1  ;;  %v418_v8 = vadd.f32 %v564_v5, %v369_v1 }
  0xf3   :  { %v567_v10 = vadd.f32 %v566_v7, %v565_v2 }
  0xf4   :  { %505 = vst [vmem:[%s764_s3] sm:$0xff] %v504_v4   ;;  %v372_v9 = vadd.f32 %v539_v6, %v452_v42  ;;  %v426_v12 = vmax.f32 %v418_v8, 0.0 }
  0xf6   :  { %v421_v11 = vadd.f32 %v567_v10, %v372_v9 }
  0xf8   :  { %v427_v13 = vmax.f32 %v421_v11, 0.0 }
  0xfa   :  { %v509_v14 = vpack.c.bf16 %v427_v13, %v426_v12 }
  0xfc   :  { %511 = vst [vmem:[%s764_s3 + $0x8] sm:$0xff] %v509_v14  }

// kernel: qrdqn_forward.5
= control target key start
LH: loop header
LB: loop body
LE: loop exit
PB: predicated region body
PF: predicated region fallthrough
CT: control target
= control target key end

     0   :  { %v2789_v22 = vmov 1966171168   ;;  %v112_v24 = vlaneseq  ;;  %v2790_v40 = vmov 0.0   ;;  %vm2791_vm0 = vmmov 0   ;;  %s3605_s1 = inlined_call_operand.vmem [shape: bf16[576,64], index: 1, kind: input, shape index: {}]   ;;  %s3606_s0 = inlined_call_operand.vmem [shape: bf16[4,2,576], index: 0, kind: input, shape index: {}]   ;;  %s3607_s3 = inlined_call_operand.vmem [shape: bf16[4,64,512], index: 3, kind: input, shape index: {}]   ;;  %s3608_s2 = inlined_call_operand.vmem [shape: f32[1,64], index: 2, kind: input, shape index: {}]   ;;  %s3609_s5 = inlined_call_operand.vmem [shape: bf16[512,128], index: 5, kind: input, shape index: {}]   ;;  %s3610_s4 = inlined_call_operand.vmem [shape: f32[1,512], index: 4, kind: input, shape index: {}]   ;;  %s3611_s6 = inlined_call_operand.vmem [shape: f32[1,128], index: 6, kind: input, shape index: {}]   ;;  %s3612_s7 = inlined_call_operand.vmem [shape: f32[2,128], index: 7, kind: output, shape index: {}]  }
   0x1   :  { %v2836_v0 = vld [vmem:[%s3605_s1 + $0x78] sm:$0xff]   ;;  %v2859_v4 = vld [vmem:[%s3605_s1 + $0x70] sm:$0xff]   ;;  %v2883_v8 = vld [vmem:[%s3605_s1 + $0x68] sm:$0xff]   ;;  %v110_v23 = vunpack.c.l.s4 %v2789_v22  ;;  %vm367_vm1 = vcmask 523264  }
   0x2   :  { %v2841_v1 = vld [vmem:[%s3605_s1 + $0xf8] sm:$0xff]   ;;  %2320 = vmatprep.subr.bf16.mxu0 %v2836_v0  ;;  %v2865_v5 = vld [vmem:[%s3605_s1 + $0xf0] sm:$0xff]   ;;  %v2889_v9 = vld [vmem:[%s3605_s1 + $0xe8] sm:$0xff]   ;;  %v2987_v30 = vshrl.u32 %v112_v24, 7 }
   0x3   :  { %v2847_v2 = vld [vmem:[%s3605_s1 + $0x38] sm:$0xff]   ;;  %2342 = vmatprep.subr.bf16.mxu1 %v2841_v1  ;;  %v2871_v6 = vld [vmem:[%s3605_s1 + $0x30] sm:$0xff]   ;;  %v2895_v10 = vld [vmem:[%s3605_s1 + $0x28] sm:$0xff]   ;;  %v111_v29 = vunpack.c.0.s8 %v110_v23 }
   0x4   :  { %v2853_v3 = vld [vmem:[%s3605_s1 + $0xb8] sm:$0xff]   ;;  %2321 = vmatpush3.bf16.msra.mxu0 %v2847_v2  ;;  %v2877_v7 = vld [vmem:[%s3605_s1 + $0xb0] sm:$0xff]   ;;  %v2901_v11 = vld [vmem:[%s3605_s1 + $0xa8] sm:$0xff]  }
   0x5   :  { %2343 = vmatpush3.bf16.msra.mxu1 %v2853_v3  ;;  %2322 = vmatprep.subr.bf16.mxu0 %v2859_v4  ;;  %v2907_v12 = vld [vmem:[%s3605_s1 + $0x60] sm:$0xff]   ;;  %v2931_v16 = vld [vmem:[%s3605_s1 + $0x58] sm:$0xff]   ;;  %v2955_v20 = vld [vmem:[%s3605_s1 + $0x50] sm:$0xff]   ;;  %v3014_v35 = vsub.s32 %v111_v29, %v2987_v30 }
   0x6   :  { %2344 = vmatprep.subr.bf16.mxu1 %v2865_v5  ;;  %v2913_v13 = vld [vmem:[%s3605_s1 + $0xe0] sm:$0xff]   ;;  %v2937_v17 = vld [vmem:[%s3605_s1 + $0xd8] sm:$0xff]   ;;  %v2961_v21 = vld [vmem:[%s3605_s1 + $0xd0] sm:$0xff]  }
   0x7   :  { %v2919_v14 = vld [vmem:[%s3605_s1 + $0x20] sm:$0xff]   ;;  %v2943_v18 = vld [vmem:[%s3605_s1 + $0x18] sm:$0xff]   ;;  %v2967_v25 = vld [vmem:[%s3605_s1 + $0x10] sm:$0xff]  }
   0x8   :  { %2323 = vmatpush3.bf16.msra.mxu0 %v2871_v6  ;;  %v2925_v15 = vld [vmem:[%s3605_s1 + $0xa0] sm:$0xff]   ;;  %v2949_v19 = vld [vmem:[%s3605_s1 + $0x98] sm:$0xff]   ;;  %v2973_v26 = vld [vmem:[%s3605_s1 + $0x90] sm:$0xff]  }
   0x9   :  { %2345 = vmatpush3.bf16.msra.mxu1 %v2877_v7  ;;  %2324 = vmatprep.subr.bf16.mxu0 %v2883_v8  ;;  %v2979_v27 = vld [vmem:[%s3605_s1 + $0x48] sm:$0xff]   ;;  %v3005_v33 = vld [vmem:[%s3605_s1 + $0x40] sm:$0xff]   ;;  %v3046_v45 = vld [vmem:[%s3605_s1 + $0x118] sm:$0xff]  }
   0xa   :  { %2346 = vmatprep.subr.bf16.mxu1 %v2889_v9  ;;  %v2985_v28 = vld [vmem:[%s3605_s1 + $0xc8] sm:$0xff]   ;;  %v3011_v34 = vld [vmem:[%s3605_s1 + $0xc0] sm:$0xff]   ;;  %v3054_v50 = vld [vmem:[%s3605_s1 + $0x110] sm:$0xff]  }
   0xb   :  { %v2993_v31 = vld [vmem:[%s3605_s1 + $0x8] sm:$0xff]   ;;  %v3020_v36 = vld [vmem:[%s3605_s1] sm:$0xff]  }
   0xc   :  { %2325 = vmatpush3.bf16.msra.mxu0 %v2895_v10  ;;  %v2999_v32 = vld [vmem:[%s3605_s1 + $0x88] sm:$0xff]   ;;  %v3026_v37 = vld [vmem:[%s3605_s1 + $0x80] sm:$0xff]  }
   0xd   :  { %2347 = vmatpush3.bf16.msra.mxu1 %v2901_v11  ;;  %2326 = vmatprep.subr.bf16.mxu0 %v2907_v12  ;;  %v27_v38 = vld [vmem:[%s3606_s0] sm:$0x1f]  ;;  %v3040_v43 = vld [vmem:[%s3606_s0 + $0x5] sm:$0x1f]  ;;  %v2655_v24 = vld [vmem:[%s3607_s3 + $0xec] ss:$16 sps:$4 sm:$0xff]  }
   0xe   :  { %2348 = vmatprep.subr.bf16.mxu1 %v2913_v13  ;;  %v115_v39 = vrot.slane %v27_v38, %v3014_v35  ;;  %v519_v47 = vrot.slane %v3040_v43, %v3014_v35  ;;  %v108_v52 = vcombine.high %v27_v38, %v27_v38  ;;  %v3066_v53 = vld [vmem:[%s3605_s1 + $0x108] sm:$0xff]   ;;  %v3076_v55 = vld [vmem:[%s3605_s1 + $0x100] sm:$0xff]   ;;  %v512_v59 = vcombine.high %v3040_v43, %v3040_v43 }
   0xf   :  { %v2650_v63 = vld [vmem:[%s3607_s3 + $0xe0] ss:$16 sps:$4 sm:$0xff]   ;;  %v2652_v22 = vld [vmem:[%s3607_s3 + $0xe4] ss:$16 sps:$4 sm:$0xff]   ;;  %v2653_v23 = vld [vmem:[%s3607_s3 + $0xe8] ss:$16 sps:$4 sm:$0xff]  }
  0x10   :  { %2327 = vmatpush3.bf16.msra.mxu0 %v2919_v14  ;;  %v123_v41 = vcombine.high %v115_v39, %v115_v39  ;;  %v130_v42 = vrot.slane %v115_v39, %v3014_v35  ;;  %v527_v49 = vcombine.high %v519_v47, %v519_v47  ;;  %v122_v54 = vrot.slane %v108_v52, %v3014_v35  ;;  %v2658_v29 = vld [vmem:[%s3607_s3 + $0xc4] ss:$16 sps:$4 sm:$0xff]   ;;  %v2661_v38 = vld [vmem:[%s3607_s3 + $0xcc] ss:$16 sps:$4 sm:$0xff]   ;;  %v2656_v39 = vld [vmem:[%s3607_s3 + $0xc0] ss:$16 sps:$4 sm:$0xff]  }
  0x11   :  { %2349 = vmatpush3.bf16.msra.mxu1 %v2925_v15  ;;  %2328 = vmatprep.subr.bf16.mxu0 %v2931_v16  ;;  %v534_v58 = vrot.slane %v519_v47, %v3014_v35  ;;  %v526_v60 = vrot.slane %v512_v59, %v3014_v35  ;;  %v2667_v43 = vld [vmem:[%s3607_s3 + $0xac] ss:$16 sps:$4 sm:$0xff]   ;;  %v2670_v47 = vld [vmem:[%s3607_s3 + $0x84] ss:$16 sps:$4 sm:$0xff]   ;;  %v3184_v59 = vld [vmem:[%s3608_s2] ss:$0 sm:$0xff] }
  0x12   :  { %2350 = vmatprep.subr.bf16.mxu1 %v2937_v17  ;;  %v144_v44 = vrot.slane %v123_v41, %v3014_v35  ;;  %v145_v46 = vcombine.high %v130_v42, %v130_v42  ;;  %v548_v51 = vrot.slane %v527_v49, %v3014_v35  ;;  %v137_v56 = vrot.slane %v122_v54, %v3014_v35  ;;  %v2659_v41 = vld [vmem:[%s3607_s3 + $0xc8] ss:$16 sps:$4 sm:$0xff]   ;;  %v2668_v49 = vld [vmem:[%s3607_s3 + $0x80] ss:$16 sps:$4 sm:$0xff]   ;;  %v2676_v52 = vld [vmem:[%s3607_s3 + $0x64] ss:$16 sps:$4 sm:$0xff]  }
  0x13   :  { %v549_v61 = vcombine.high %v534_v58, %v534_v58  ;;  %v541_v62 = vrot.slane %v526_v60, %v3014_v35  ;;  %v2792_v54 = vmov 0  }
  0x14   :  { %2329 = vmatpush3.bf16.msra.mxu0 %v2943_v18  ;;  %403 = vmatprep.mubr.bf16.mxu0 %v144_v44  ;;  %v146_v48 = vcombine.high %v144_v44, %v144_v44  ;;  %v550_v57 = vcombine.high %v548_v51, %v548_v51  ;;  %v2662_v44 = vld [vmem:[%s3607_s3 + $0xa0] ss:$16 sps:$4 sm:$0xff]  }
  0x15   :  { %2351 = vmatpush3.bf16.msra.mxu1 %v2949_v19  ;;  %2330 = vmatprep.subr.bf16.mxu0 %v2955_v20 }
  0x16   :  { %2352 = vmatprep.subr.bf16.mxu1 %v2961_v21  ;;  %443 = vmatprep.mubr.bf16.mxu1 %v146_v48  ;;  %v2673_v48 = vld [vmem:[%s3607_s3 + $0x8c] ss:$16 sps:$4 sm:$0xff]  }
  0x18   :  { %2331 = vmatpush3.bf16.msra.mxu0 %v2967_v25 }
  0x19   :  { %2353 = vmatpush3.bf16.msra.mxu1 %v2973_v26  ;;  %2332 = vmatprep.subr.bf16.mxu0 %v2979_v27 }
  0x1a   :  { %2354 = vmatprep.subr.bf16.mxu1 %v2985_v28 }
  0x1c   :  { %2333 = vmatpush3.bf16.msra.mxu0 %v2993_v31 }
  0x1d   :  { %2355 = vmatpush3.bf16.msra.mxu1 %v2999_v32  ;;  %2334 = vmatprep.subr.bf16.mxu0 %v3005_v33 }
  0x1e   :  { %2356 = vmatprep.subr.bf16.mxu1 %v3011_v34 }
  0x20   :  { %2335 = vmatpush3.bf16.msra.mxu0 %v3020_v36 }
  0x21   :  { %2357 = vmatpush3.bf16.msra.mxu1 %v3026_v37  ;;  %2560 = vmatprep.subr.bf16.mxu0 %v2790_v40 }
  0x22   :  { %2369 = vmatprep.subr.bf16.mxu1 %v2836_v0 }
  0x23   :  { %404 = vmatmul.mubr.bf16.vlgmr.msra.gmra.mxu0 %v130_v42  ;;  %v2664_v42 = vld [vmem:[%s3607_s3 + $0xa4] ss:$16 sps:$4 sm:$0xff]  }
  0x24   :  { %2561 = vmatpush3.bf16.msra.mxu0 %v3046_v45  ;;  %444 = vmatmul.mubr.bf16.vlgmr.msra.gmra.mxu1 %v145_v46  ;;  %v2665_v46 = vld [vmem:[%s3607_s3 + $0xa8] ss:$16 sps:$4 sm:$0xff]  }
  0x25   :  { %2562 = vmatprep.subr.bf16.mxu0 %v2790_v40  ;;  %2370 = vmatpush3.bf16.msra.mxu1 %v2847_v2 }
  0x26   :  { %2568 = vmatprep.mubr.msk.bf16.mxu0 %vm2791_vm0, %v2790_v40  ;;  %2371 = vmatprep.subr.bf16.mxu1 %v2859_v4 }
  0x27   :  { %590 = vmatprep.mubr.bf16.mxu1 %v548_v51  ;;  %v2671_v51 = vld [vmem:[%s3607_s3 + $0x88] ss:$16 sps:$4 sm:$0xff]  }
  0x28   :  { %2563 = vmatpush3.bf16.msra.mxu0 %v3054_v50 }
  0x29   :  { %2564 = vmatprep.subr.bf16.mxu0 %v2790_v40  ;;  %2372 = vmatpush3.bf16.msra.mxu1 %v2871_v6 }
  0x2a   :  { %2373 = vmatprep.subr.bf16.mxu1 %v2883_v8 }
  0x2c   :  { %2565 = vmatpush3.bf16.msra.mxu0 %v3066_v53 }
  0x2d   :  { %2566 = vmatprep.subr.bf16.mxu0 %v2790_v40  ;;  %2374 = vmatpush3.bf16.msra.mxu1 %v2895_v10 }
  0x2e   :  { %2375 = vmatprep.subr.bf16.mxu1 %v2907_v12 }
  0x30   :  { %2567 = vmatpush3.bf16.msra.mxu0 %v3076_v55 }
  0x31   :  { %2391 = vmatprep.subr.bf16.mxu0 %v2841_v1  ;;  %2376 = vmatpush3.bf16.msra.mxu1 %v2919_v14 }
  0x32   :  { %2377 = vmatprep.subr.bf16.mxu1 %v2931_v16 }
  0x33   :  { %2569 = vmatmul.mubr.msk.bf16.vlgmr.msra.gmra.mxu0 %vm367_vm1, %v137_v56  ;;  %v2679_v56 = vld [vmem:[%s3607_s3 + $0x6c] ss:$16 sps:$4 sm:$0xff]  }
  0x34   :  { %2392 = vmatpush3.bf16.msra.mxu0 %v2853_v3  ;;  %630 = vmatprep.mubr.bf16.mxu0 %v550_v57 }
  0x35   :  { %2393 = vmatprep.subr.bf16.mxu0 %v2865_v5  ;;  %2378 = vmatpush3.bf16.msra.mxu1 %v2943_v18 }
  0x36   :  { %2379 = vmatprep.subr.bf16.mxu1 %v2955_v20 }
  0x38   :  { %2394 = vmatpush3.bf16.msra.mxu0 %v2877_v7 }
  0x39   :  { %2395 = vmatprep.subr.bf16.mxu0 %v2889_v9  ;;  %2380 = vmatpush3.bf16.msra.mxu1 %v2967_v25 }
  0x3a   :  { %2381 = vmatprep.subr.bf16.mxu1 %v2979_v27 }
  0x3c   :  { %2396 = vmatpush3.bf16.msra.mxu0 %v2901_v11 }
  0x3d   :  { %2397 = vmatprep.subr.bf16.mxu0 %v2913_v13  ;;  %2382 = vmatpush3.bf16.msra.mxu1 %v2993_v31 }
  0x3e   :  { %2383 = vmatprep.subr.bf16.mxu1 %v3005_v33 }
  0x40   :  { %2398 = vmatpush3.bf16.msra.mxu0 %v2925_v15 }
  0x41   :  { %2399 = vmatprep.subr.bf16.mxu0 %v2937_v17  ;;  %2384 = vmatpush3.bf16.msra.mxu1 %v3020_v36 }
  0x42   :  { %2572 = vmatprep.subr.bf16.mxu1 %v2790_v40 }
  0x44   :  { %2400 = vmatpush3.bf16.msra.mxu0 %v2949_v19  ;;  %591 = vmatmul.mubr.bf16.vlgmr.msra.gmra.mxu1 %v534_v58 }
  0x45   :  { %2401 = vmatprep.subr.bf16.mxu0 %v2961_v21  ;;  %2573 = vmatpush3.bf16.msra.mxu1 %v3046_v45 }
  0x46   :  { %2580 = vmatprep.mubr.msk.bf16.mxu1 %vm2791_vm0, %v2790_v40  ;;  %2574 = vmatprep.subr.bf16.mxu1 %v2790_v40 }
  0x48   :  { %2402 = vmatpush3.bf16.msra.mxu0 %v2973_v26 }
  0x49   :  { %2403 = vmatprep.subr.bf16.mxu0 %v2985_v28  ;;  %2575 = vmatpush3.bf16.msra.mxu1 %v3054_v50 }
  0x4a   :  { %2576 = vmatprep.subr.bf16.mxu1 %v2790_v40 }
  0x4c   :  { %2404 = vmatpush3.bf16.msra.mxu0 %v2999_v32 }
  0x4d   :  { %2405 = vmatprep.subr.bf16.mxu0 %v3011_v34  ;;  %2577 = vmatpush3.bf16.msra.mxu1 %v3066_v53 }
  0x4e   :  { %2578 = vmatprep.subr.bf16.mxu1 %v2790_v40 }
  0x50   :  { %2406 = vmatpush3.bf16.msra.mxu0 %v3026_v37 }
  0x51   :  { %2579 = vmatpush3.bf16.msra.mxu1 %v3076_v55  ;;  %788 = vmatprep.subr.bf16.mxu0 %v2652_v22 }
  0x52   :  { %829 = vmatprep.subr.bf16.mxu1 %v2655_v24 }
  0x53   :  { %631 = vmatmul.mubr.bf16.vlgmr.msra.gmra.mxu0 %v549_v61 }
  0x54   :  { %2581 = vmatmul.mubr.msk.bf16.vlgmr.msra.gmra.mxu1 %vm367_vm1, %v541_v62  ;;  %789 = vmatpush1.bf16.msra.mxu0 %v2650_v63 }
  0x55   :  { %830 = vmatpush1.bf16.msra.mxu1 %v2653_v23  ;;  %790 = vmatprep.subr.bf16.mxu0 %v2658_v29 }
  0x56   :  { %831 = vmatprep.subr.bf16.mxu1 %v2661_v38  ;;  %812 = vmatprep.mubr.bf16.mxu0 %v2792_v54 }
  0x57   :  { %853 = vmatprep.mubr.bf16.mxu1 %v2792_v54 }
  0x58   :  { %791 = vmatpush1.bf16.msra.mxu0 %v2656_v39 }
  0x59   :  { %832 = vmatpush1.bf16.msra.mxu1 %v2659_v41  ;;  %792 = vmatprep.subr.bf16.mxu0 %v2664_v42 }
  0x5a   :  { %833 = vmatprep.subr.bf16.mxu1 %v2667_v43 }
  0x5c   :  { %793 = vmatpush1.bf16.msra.mxu0 %v2662_v44 }
  0x5d   :  { %834 = vmatpush1.bf16.msra.mxu1 %v2665_v46  ;;  %794 = vmatprep.subr.bf16.mxu0 %v2670_v47 }
  0x5e   :  { %835 = vmatprep.subr.bf16.mxu1 %v2673_v48 }
  0x60   :  { %795 = vmatpush1.bf16.msra.mxu0 %v2668_v49 }
  0x61   :  { %836 = vmatpush1.bf16.msra.mxu1 %v2671_v51  ;;  %953 = vmatprep.subr.bf16.mxu0 %v2676_v52 }
  0x62   :  { %994 = vmatprep.subr.bf16.mxu1 %v2679_v56 }
  0xe3   :  { %v2336_v57 = vpop.f32.mrf.mxu0 }
  0xe4   :  { %v2358_v58 = vpop.f32.mrf.mxu1 }
  0xe5   :  { %v2337_v60 = vpop.f32.mrf.mxu0 }
  0xe6   :  { %v2338_v61 = vadd.f32 %v2337_v60, %v2336_v57  ;;  %v2359_v62 = vpop.f32.mrf.mxu1 }
  0xe7   :  { %v2339_v63 = vpop.f32.mrf.mxu0  ;;  %v2360_v23 = vadd.f32 %v2359_v62, %v2358_v58 }
  0xe8   :  { %v406_v22 = vadd.f32 %v2338_v61, %v3184_v59  ;;  %v2361_v24 = vpop.f32.mrf.mxu1 }
  0xe9   :  { %v2340_v29 = vpop.f32.mrf.mxu0 }
  0xea   :  { %v446_v38 = vadd.f32 %v2360_v23, %v406_v22  ;;  %v2362_v39 = vpop.f32.mrf.mxu1 }
  0xf3   :  { %v485_v41 = vpop.f32.mrf.mxu0 }
  0xf5   :  { %v2570_v42 = vpop.f32.mrf.mxu0 }
  0xf6   :  { %v2674_v42 = vld [vmem:[%s3607_s3 + $0x60] ss:$16 sps:$4 sm:$0xff]  }
  0xf7   :  { %v488_v43 = vpop.f32.mrf.mxu0 }
  0xf8   :  { %v2677_v43 = vld [vmem:[%s3607_s3 + $0x68] ss:$16 sps:$4 sm:$0xff]  }
  0xf9   :  { %v2571_v44 = vpop.f32.mrf.mxu0 }
 0x104   :  { %v2385_v46 = vpop.f32.mrf.mxu1 }
 0x106   :  { %v2386_v47 = vpop.f32.mrf.mxu1 }
 0x107   :  { %v2387_v51 = vadd.f32 %v2386_v47, %v2385_v46  ;;  %v2682_v46 = vld [vmem:[%s3607_s3 + $0x44] ss:$16 sps:$4 sm:$0xff]   ;;  %v2685_v47 = vld [vmem:[%s3607_s3 + $0x4c] ss:$16 sps:$4 sm:$0xff]  }
 0x108   :  { %v2388_v48 = vpop.f32.mrf.mxu1 }
 0x109   :  { %v593_v60 = vadd.f32 %v2387_v51, %v3184_v59  ;;  %v3205_v48 = vld [vmem:[%s3606_s0 + $0xa] sm:$0x1f] }
 0x10a   :  { %v2389_v49 = vpop.f32.mrf.mxu1  ;;  %v2683_v51 = vld [vmem:[%s3607_s3 + $0x48] ss:$16 sps:$4 sm:$0xff]  }
 0x10b   :  { %v2680_v49 = vld [vmem:[%s3607_s3 + $0x40] ss:$16 sps:$4 sm:$0xff]  }
 0x113   :  { %v2407_v52 = vpop.f32.mrf.mxu0 }
 0x114   :  { %v672_v56 = vpop.f32.mrf.mxu1 }
 0x115   :  { %v2408_v57 = vpop.f32.mrf.mxu0 }
 0x116   :  { %v2409_v61 = vadd.f32 %v2408_v57, %v2407_v52  ;;  %v2582_v58 = vpop.f32.mrf.mxu1  ;;  %v2688_v52 = vld [vmem:[%s3607_s3 + $0x24] ss:$16 sps:$4 sm:$0xff]   ;;  %v1037_v57 = vrot.slane %v3205_v48, %v3014_v35 }
 0x117   :  { %v2410_v62 = vpop.f32.mrf.mxu0  ;;  %v486_v58 = vadd.f32 %v485_v41, %v446_v38  ;;  %v2695_v38 = vld [vmem:[%s3607_s3 + $0x8] ss:$16 sps:$4 sm:$0xff]  }
 0x118   :  { %v633_v63 = vadd.f32 %v2409_v61, %v593_v60  ;;  %v675_v22 = vpop.f32.mrf.mxu1  ;;  %v2686_v60 = vld [vmem:[%s3607_s3 + $0x20] ss:$16 sps:$4 sm:$0xff]   ;;  %v2689_v61 = vld [vmem:[%s3607_s3 + $0x28] ss:$16 sps:$4 sm:$0xff]   ;;  %v2694_v62 = vld [vmem:[%s3607_s3 + $0x4] ss:$16 sps:$4 sm:$0xff]  }
 0x119   :  { %v2411_v23 = vpop.f32.mrf.mxu0  ;;  %v1045_v22 = vcombine.high %v1037_v57, %v1037_v57  ;;  %v491_v41 = vmax.f32 %v486_v58, 0.0 }
 0x11a   :  { %v673_v24 = vadd.f32 %v672_v56, %v633_v63  ;;  %v2583_v29 = vpop.f32.mrf.mxu1  ;;  %v2691_v56 = vld [vmem:[%s3607_s3 + $0x2c] ss:$16 sps:$4 sm:$0xff]   ;;  %v2692_v23 = vld [vmem:[%s3607_s3] ss:$16 sps:$4 sm:$0xff]  }
 0x11b   :  { %v2697_v63 = vld [vmem:[%s3607_s3 + $0xc] ss:$16 sps:$4 sm:$0xff]   ;;  %v492_v29 = vpack.c.bf16 %v491_v41, %v491_v41 }
 0x11c   :  { %v678_v39 = vmax.f32 %v673_v24, 0.0  ;;  %v1066_v24 = vrot.slane %v1045_v22, %v3014_v35 }
 0x11e   :  { %v679_v44 = vpack.c.bf16 %v678_v39, %v678_v39  ;;  %v1068_v39 = vcombine.high %v1066_v24, %v1066_v24 }
 0x120   :  { %2195 = vmatmul.mubr.msk.bf16.vlgmr.msra.gmra.mxu0 %vm367_vm1, %v679_v44  ;;  %2196 = vmatmul.mubr.msk.bf16.vlgmr.msra.gmra.mxu1 %vm367_vm1, %v679_v44  ;;  %v2710_v44 = vld [vmem:[%s3607_s3 + $0x14c] ss:$16 sps:$4 sm:$0xff]  }
 0x121   :  { %954 = vmatpush1.bf16.msra.mxu0 %v2674_v42  ;;  %995 = vmatpush1.bf16.msra.mxu1 %v2677_v43  ;;  %v2707_v42 = vld [vmem:[%s3607_s3 + $0x144] ss:$16 sps:$4 sm:$0xff]   ;;  %v2705_v43 = vld [vmem:[%s3607_s3 + $0x140] ss:$16 sps:$4 sm:$0xff]  }
 0x122   :  { %955 = vmatprep.subr.bf16.mxu0 %v2682_v46  ;;  %996 = vmatprep.subr.bf16.mxu1 %v2685_v47  ;;  %v2708_v46 = vld [vmem:[%s3607_s3 + $0x148] ss:$16 sps:$4 sm:$0xff]   ;;  %v2713_v47 = vld [vmem:[%s3607_s3 + $0x124] ss:$16 sps:$4 sm:$0xff]  }
 0x123   :  { %977 = vmatprep.mubr.bf16.mxu0 %v2792_v54  ;;  %1018 = vmatprep.mubr.bf16.mxu1 %v2792_v54 }
 0x125   :  { %956 = vmatpush1.bf16.msra.mxu0 %v2680_v49  ;;  %997 = vmatpush1.bf16.msra.mxu1 %v2683_v51  ;;  %v2711_v49 = vld [vmem:[%s3607_s3 + $0x120] ss:$16 sps:$4 sm:$0xff]   ;;  %v2714_v51 = vld [vmem:[%s3607_s3 + $0x128] ss:$16 sps:$4 sm:$0xff]  }
 0x126   :  { %957 = vmatprep.subr.bf16.mxu0 %v2688_v52  ;;  %998 = vmatprep.subr.bf16.mxu1 %v2691_v56  ;;  %v2719_v52 = vld [vmem:[%s3607_s3 + $0x104] ss:$16 sps:$4 sm:$0xff]   ;;  %v2717_v56 = vld [vmem:[%s3607_s3 + $0x100] ss:$16 sps:$4 sm:$0xff]  }
 0x129   :  { %958 = vmatpush1.bf16.msra.mxu0 %v2686_v60  ;;  %999 = vmatpush1.bf16.msra.mxu1 %v2689_v61  ;;  %v2720_v60 = vld [vmem:[%s3607_s3 + $0x108] ss:$16 sps:$4 sm:$0xff]  }
 0x12a   :  { %959 = vmatprep.subr.bf16.mxu0 %v2694_v62  ;;  %1000 = vmatprep.subr.bf16.mxu1 %v2697_v63 }
 0x12d   :  { %960 = vmatpush1.bf16.msra.mxu0 %v2692_v23  ;;  %1001 = vmatpush1.bf16.msra.mxu1 %v2695_v38 }
 0x12e   :  { %2418 = vmatprep.subr.bf16.mxu0 %v2836_v0  ;;  %2440 = vmatprep.subr.bf16.mxu1 %v2841_v1 }
 0x130   :  { %2213 = vmatmul.mubr.msk.bf16.vlgmr.msra.gmra.mxu0 %vm367_vm1, %v492_v29  ;;  %2214 = vmatmul.mubr.msk.bf16.vlgmr.msra.gmra.mxu1 %vm367_vm1, %v492_v29 }
 0x131   :  { %2419 = vmatpush3.bf16.msra.mxu0 %v2847_v2  ;;  %2441 = vmatpush3.bf16.msra.mxu1 %v2853_v3  ;;  %v1052_v2 = vrot.slane %v1037_v57, %v3014_v35  ;;  %v2722_v57 = vld [vmem:[%s3607_s3 + $0x10c] ss:$16 sps:$4 sm:$0xff]  }
 0x132   :  { %2420 = vmatprep.subr.bf16.mxu0 %v2859_v4  ;;  %2442 = vmatprep.subr.bf16.mxu1 %v2865_v5  ;;  %v1030_v4 = vcombine.high %v3205_v48, %v3205_v48  ;;  %v2716_v48 = vld [vmem:[%s3607_s3 + $0x12c] ss:$16 sps:$4 sm:$0xff]  }
 0x133   :  { %1108 = vmatprep.mubr.bf16.mxu0 %v1066_v24  ;;  %1148 = vmatprep.mubr.bf16.mxu1 %v1068_v39  ;;  %v1067_v3 = vcombine.high %v1052_v2, %v1052_v2 }
 0x134   :  { %v1044_v5 = vrot.slane %v1030_v4, %v3014_v35 }
 0x135   :  { %2421 = vmatpush3.bf16.msra.mxu0 %v2871_v6  ;;  %2443 = vmatpush3.bf16.msra.mxu1 %v2877_v7  ;;  %v2701_v7 = vld [vmem:[%s3607_s3 + $0x164] ss:$16 sps:$4 sm:$0xff]  }
 0x136   :  { %2422 = vmatprep.subr.bf16.mxu0 %v2883_v8  ;;  %2444 = vmatprep.subr.bf16.mxu1 %v2889_v9  ;;  %v1059_v6 = vrot.slane %v1044_v5, %v3014_v35  ;;  %v2699_v8 = vld [vmem:[%s3607_s3 + $0x160] ss:$16 sps:$4 sm:$0xff]   ;;  %v2702_v9 = vld [vmem:[%s3607_s3 + $0x168] ss:$16 sps:$4 sm:$0xff]  }
 0x139   :  { %2423 = vmatpush3.bf16.msra.mxu0 %v2895_v10  ;;  %2445 = vmatpush3.bf16.msra.mxu1 %v2901_v11  ;;  %v2704_v10 = vld [vmem:[%s3607_s3 + $0x16c] ss:$16 sps:$4 sm:$0xff]  }
 0x13a   :  { %2424 = vmatprep.subr.bf16.mxu0 %v2907_v12  ;;  %2446 = vmatprep.subr.bf16.mxu1 %v2913_v13 }
 0x13d   :  { %2425 = vmatpush3.bf16.msra.mxu0 %v2919_v14  ;;  %2447 = vmatpush3.bf16.msra.mxu1 %v2925_v15 }
 0x13e   :  { %2426 = vmatprep.subr.bf16.mxu0 %v2931_v16  ;;  %2448 = vmatprep.subr.bf16.mxu1 %v2937_v17 }
 0x141   :  { %2427 = vmatpush3.bf16.msra.mxu0 %v2943_v18  ;;  %2449 = vmatpush3.bf16.msra.mxu1 %v2949_v19 }
 0x142   :  { %2428 = vmatprep.subr.bf16.mxu0 %v2955_v20  ;;  %2450 = vmatprep.subr.bf16.mxu1 %v2961_v21 }
 0x145   :  { %2429 = vmatpush3.bf16.msra.mxu0 %v2967_v25  ;;  %2451 = vmatpush3.bf16.msra.mxu1 %v2973_v26 }
 0x146   :  { %2430 = vmatprep.subr.bf16.mxu0 %v2979_v27  ;;  %2452 = vmatprep.subr.bf16.mxu1 %v2985_v28 }
 0x149   :  { %2431 = vmatpush3.bf16.msra.mxu0 %v2993_v31  ;;  %2453 = vmatpush3.bf16.msra.mxu1 %v2999_v32 }
 0x14a   :  { %2432 = vmatprep.subr.bf16.mxu0 %v3005_v33  ;;  %2454 = vmatprep.subr.bf16.mxu1 %v3011_v34 }
 0x14d   :  { %2433 = vmatpush3.bf16.msra.mxu0 %v3020_v36  ;;  %2455 = vmatpush3.bf16.msra.mxu1 %v3026_v37 }
 0x14e   :  { %2584 = vmatprep.subr.bf16.mxu0 %v2790_v40  ;;  %1306 = vmatprep.subr.bf16.mxu1 %v2701_v7 }
 0x150   :  { %1109 = vmatmul.mubr.bf16.vlgmr.msra.gmra.mxu0 %v1052_v2  ;;  %1149 = vmatmul.mubr.bf16.vlgmr.msra.gmra.mxu1 %v1067_v3 }
 0x151   :  { %2585 = vmatpush3.bf16.msra.mxu0 %v3046_v45  ;;  %2592 = vmatprep.mubr.msk.bf16.mxu0 %vm2791_vm0, %v2790_v40 }
 0x152   :  { %2586 = vmatprep.subr.bf16.mxu0 %v2790_v40  ;;  %1330 = vmatprep.mubr.bf16.mxu1 %v2792_v54 }
 0x153   :  { %1307 = vmatpush1.bf16.msra.mxu1 %v2699_v8 }
 0x154   :  { %1308 = vmatprep.subr.bf16.mxu1 %v2707_v42 }
 0x155   :  { %2587 = vmatpush3.bf16.msra.mxu0 %v3054_v50 }
 0x156   :  { %2588 = vmatprep.subr.bf16.mxu0 %v2790_v40 }
 0x157   :  { %1309 = vmatpush1.bf16.msra.mxu1 %v2705_v43 }
 0x158   :  { %1310 = vmatprep.subr.bf16.mxu1 %v2713_v47 }
 0x159   :  { %2589 = vmatpush3.bf16.msra.mxu0 %v3066_v53 }
 0x15a   :  { %2590 = vmatprep.subr.bf16.mxu0 %v2790_v40 }
 0x15b   :  { %1311 = vmatpush1.bf16.msra.mxu1 %v2711_v49 }
 0x15c   :  { %1312 = vmatprep.subr.bf16.mxu1 %v2719_v52 }
 0x15d   :  { %2591 = vmatpush3.bf16.msra.mxu0 %v3076_v55 }
 0x15e   :  { %1347 = vmatprep.subr.bf16.mxu0 %v2704_v10 }
 0x15f   :  { %1313 = vmatpush1.bf16.msra.mxu1 %v2717_v56 }
 0x160   :  { %2593 = vmatmul.mubr.msk.bf16.vlgmr.msra.gmra.mxu0 %vm367_vm1, %v1059_v6  ;;  %2467 = vmatprep.subr.bf16.mxu1 %v2836_v0 }
 0x161   :  { %1371 = vmatprep.mubr.bf16.mxu0 %v2792_v54  ;;  %1348 = vmatpush1.bf16.msra.mxu0 %v2702_v9 }
 0x162   :  { %1349 = vmatprep.subr.bf16.mxu0 %v2710_v44 }
 0x165   :  { %1350 = vmatpush1.bf16.msra.mxu0 %v2708_v46 }
 0x166   :  { %1351 = vmatprep.subr.bf16.mxu0 %v2716_v48 }
 0x169   :  { %1352 = vmatpush1.bf16.msra.mxu0 %v2714_v51  ;;  %v3355_v51 = vld [vmem:[%s3606_s0 + $0xf] sm:$0x1f] }
 0x16a   :  { %1353 = vmatprep.subr.bf16.mxu0 %v2722_v57  ;;  %v1394_v52 = vrot.slane %v3355_v51, %v3014_v35 }
 0x16d   :  { %1354 = vmatpush1.bf16.msra.mxu0 %v2720_v60  ;;  %v1402_v60 = vcombine.high %v1394_v52, %v1394_v52 }
 0x16e   :  { %2489 = vmatprep.subr.bf16.mxu0 %v2841_v1 }
 0x1e0   :  { %v814_v61 = vpop.f32.mrf.mxu0  ;;  %v855_v58 = vpop.f32.mrf.mxu1 }
 0x1e2   :  { %v816_v62 = vpop.f32.mrf.mxu0  ;;  %v857_v63 = vpop.f32.mrf.mxu1 }
 0x1e4   :  { %v818_v22 = vpop.f32.mrf.mxu0  ;;  %v859_v23 = vpop.f32.mrf.mxu1 }
 0x1e5   :  { %v1423_v22 = vrot.slane %v1402_v60, %v3014_v35 }
 0x1e6   :  { %v819_v38 = vpop.f32.mrf.mxu0  ;;  %v860_v41 = vpop.f32.mrf.mxu1 }
 0x1f0   :  { %v979_v24 = vpop.f32.mrf.mxu0  ;;  %v1020_v29 = vpop.f32.mrf.mxu1 }
 0x1f1   :  { %v3344_v39 = vadd.f32 %v979_v24, %v814_v61  ;;  %v3346_v2 = vadd.f32 %v1020_v29, %v855_v58  ;;  %v1425_v29 = vcombine.high %v1423_v22, %v1423_v22 }
 0x1f2   :  { %v981_v3 = vpop.f32.mrf.mxu0  ;;  %v1022_v4 = vpop.f32.mrf.mxu1 }
 0x1f3   :  { %v3348_v5 = vadd.f32 %v981_v3, %v816_v62  ;;  %v3350_v0 = vadd.f32 %v1022_v4, %v857_v63  ;;  %v2780_v3 = vld [vmem:[%s3605_s1 + $0x38] sm:$0xff]  }
 0x1f4   :  { %v983_v1 = vpop.f32.mrf.mxu0  ;;  %v1024_v6 = vpop.f32.mrf.mxu1  ;;  %v2781_v4 = vld [vmem:[%s3605_s1 + $0xb8] sm:$0xff]  }
 0x1f5   :  { %v2782_v1 = vld [vmem:[%s3605_s1 + $0x70] sm:$0xff]  }
 0x1f6   :  { %v984_v7 = vpop.f32.mrf.mxu0  ;;  %v1025_v8 = vpop.f32.mrf.mxu1  ;;  %v2783_v6 = vld [vmem:[%s3605_s1 + $0xf0] sm:$0xff]  }
 0x1f7   :  { %v2784_v7 = vld [vmem:[%s3605_s1 + $0x30] sm:$0xff]  }
 0x1f8   :  { %v2785_v8 = vld [vmem:[%s3605_s1 + $0xb0] sm:$0xff]  }
 0x210   :  { %v2434_v9 = vpop.f32.mrf.mxu0  ;;  %v2456_v10 = vpop.f32.mrf.mxu1 }
 0x212   :  { %v2435_v42 = vpop.f32.mrf.mxu0  ;;  %v2457_v43 = vpop.f32.mrf.mxu1 }
 0x213   :  { %v2436_v49 = vadd.f32 %v2435_v42, %v2434_v9  ;;  %v2458_v57 = vadd.f32 %v2457_v43, %v2456_v10  ;;  %v2786_v9 = vld [vmem:[%s3605_s1 + $0x68] sm:$0xff]  }
 0x214   :  { %v2437_v44 = vpop.f32.mrf.mxu0  ;;  %v2459_v46 = vpop.f32.mrf.mxu1  ;;  %v2787_v10 = vld [vmem:[%s3605_s1 + $0xe8] sm:$0xff]  }
 0x215   :  { %v1111_v56 = vadd.f32 %v2436_v49, %v3184_v59  ;;  %v2788_v42 = vld [vmem:[%s3605_s1 + $0x28] sm:$0xff]  }
 0x216   :  { %v2438_v47 = vpop.f32.mrf.mxu0  ;;  %v2460_v48 = vpop.f32.mrf.mxu1 }
 0x217   :  { %v1151_v61 = vadd.f32 %v2458_v57, %v1111_v56 }
 0x220   :  { %v1190_v58 = vpop.f32.mrf.mxu0 }
 0x221   :  { %v1191_v62 = vadd.f32 %v1190_v58, %v1151_v61 }
 0x222   :  { %v2594_v63 = vpop.f32.mrf.mxu0 }
 0x223   :  { %v1196_v23 = vmax.f32 %v1191_v62, 0.0 }
 0x224   :  { %v1193_v38 = vpop.f32.mrf.mxu0 }
 0x225   :  { %v1197_v41 = vpack.c.bf16 %v1196_v23, %v1196_v23 }
 0x226   :  { %v2595_v24 = vpop.f32.mrf.mxu0 }
 0x227   :  { %2249 = vmatmul.mubr.msk.bf16.vlgmr.msra.gmra.mxu1 %vm367_vm1, %v1197_v41  ;;  %2250 = vmatmul.mubr.msk.bf16.vlgmr.msra.gmra.mxu0 %vm367_vm1, %v1197_v41 }
 0x228   :  { %2468 = vmatpush3.bf16.msra.mxu1 %v2780_v3  ;;  %2490 = vmatpush3.bf16.msra.mxu0 %v2781_v4  ;;  %v2751_v3 = vld [vmem:[%s3609_s5 + $0xb8] sm:$0xff]  }
 0x229   :  { %2469 = vmatprep.subr.bf16.mxu1 %v2782_v1  ;;  %2491 = vmatprep.subr.bf16.mxu0 %v2783_v6  ;;  %v2753_v1 = vld [vmem:[%s3609_s5 + $0xf0] sm:$0xff]  }
 0x22a   :  { %1465 = vmatprep.mubr.bf16.mxu1 %v1423_v22  ;;  %1505 = vmatprep.mubr.bf16.mxu0 %v1425_v29  ;;  %v2750_v29 = vld [vmem:[%s3609_s5 + $0x38] sm:$0xff]  }
 0x22c   :  { %2470 = vmatpush3.bf16.msra.mxu1 %v2784_v7  ;;  %2492 = vmatpush3.bf16.msra.mxu0 %v2785_v8  ;;  %v2754_v7 = vld [vmem:[%s3609_s5 + $0x30] sm:$0xff]  }
 0x22d   :  { %2471 = vmatprep.subr.bf16.mxu1 %v2786_v9  ;;  %2493 = vmatprep.subr.bf16.mxu0 %v2787_v10  ;;  %v2755_v8 = vld [vmem:[%s3609_s5 + $0xb0] sm:$0xff]   ;;  %v2756_v9 = vld [vmem:[%s3609_s5 + $0x68] sm:$0xff]  }
 0x22e   :  { %v2757_v10 = vld [vmem:[%s3609_s5 + $0xe8] sm:$0xff]  }
 0x230   :  { %2472 = vmatpush3.bf16.msra.mxu1 %v2788_v42  ;;  %2494 = vmatpush3.bf16.msra.mxu0 %v2901_v11  ;;  %v1409_v11 = vrot.slane %v1394_v52, %v3014_v35  ;;  %v2758_v42 = vld [vmem:[%s3609_s5 + $0x28] sm:$0xff]  }
 0x231   :  { %2473 = vmatprep.subr.bf16.mxu1 %v2907_v12  ;;  %2495 = vmatprep.subr.bf16.mxu0 %v2913_v13  ;;  %v1387_v13 = vcombine.high %v3355_v51, %v3355_v51 }
 0x232   :  { %v1424_v12 = vcombine.high %v1409_v11, %v1409_v11 }
 0x234   :  { %2474 = vmatpush3.bf16.msra.mxu1 %v2919_v14  ;;  %2496 = vmatpush3.bf16.msra.mxu0 %v2925_v15  ;;  %v1401_v14 = vrot.slane %v1387_v13, %v3014_v35  ;;  %v2761_v13 = vld [vmem:[%s3609_s5 + $0xe0] sm:$0xff]  }
 0x235   :  { %2475 = vmatprep.subr.bf16.mxu1 %v2931_v16  ;;  %2497 = vmatprep.subr.bf16.mxu0 %v2937_v17  ;;  %v2726_v16 = vld [vmem:[%s3607_s3 + $0x1e4] ss:$16 sps:$4 sm:$0xff]   ;;  %v2729_v17 = vld [vmem:[%s3607_s3 + $0x1ec] ss:$16 sps:$4 sm:$0xff]  }
 0x236   :  { %v1416_v15 = vrot.slane %v1401_v14, %v3014_v35  ;;  %v2742_v35 = vld [vmem:[%s3607_s3 + $0x180] ss:$16 sps:$4 sm:$0xff]  }
 0x237   :  { %v2762_v14 = vld [vmem:[%s3609_s5 + $0x20] sm:$0xff]  }
 0x238   :  { %2476 = vmatpush3.bf16.msra.mxu1 %v2943_v18  ;;  %2498 = vmatpush3.bf16.msra.mxu0 %v2949_v19  ;;  %v2724_v18 = vld [vmem:[%s3607_s3 + $0x1e0] ss:$16 sps:$4 sm:$0xff]   ;;  %v2727_v19 = vld [vmem:[%s3607_s3 + $0x1e8] ss:$16 sps:$4 sm:$0xff]  }
 0x239   :  { %2477 = vmatprep.subr.bf16.mxu1 %v2955_v20  ;;  %2499 = vmatprep.subr.bf16.mxu0 %v2961_v21  ;;  %v2732_v20 = vld [vmem:[%s3607_s3 + $0x1c4] ss:$16 sps:$4 sm:$0xff]   ;;  %v2735_v21 = vld [vmem:[%s3607_s3 + $0x1cc] ss:$16 sps:$4 sm:$0xff]  }
 0x23c   :  { %2478 = vmatpush3.bf16.msra.mxu1 %v2967_v25  ;;  %2500 = vmatpush3.bf16.msra.mxu0 %v2973_v26  ;;  %v2730_v25 = vld [vmem:[%s3607_s3 + $0x1c0] ss:$16 sps:$4 sm:$0xff]   ;;  %v2733_v26 = vld [vmem:[%s3607_s3 + $0x1c8] ss:$16 sps:$4 sm:$0xff]  }
 0x23d   :  { %2479 = vmatprep.subr.bf16.mxu1 %v2979_v27  ;;  %2501 = vmatprep.subr.bf16.mxu0 %v2985_v28  ;;  %v2738_v27 = vld [vmem:[%s3607_s3 + $0x1a4] ss:$16 sps:$4 sm:$0xff]   ;;  %v2741_v28 = vld [vmem:[%s3607_s3 + $0x1ac] ss:$16 sps:$4 sm:$0xff]  }
 0x240   :  { %2480 = vmatpush3.bf16.msra.mxu1 %v2993_v31  ;;  %2502 = vmatpush3.bf16.msra.mxu0 %v2999_v32  ;;  %v2736_v31 = vld [vmem:[%s3607_s3 + $0x1a0] ss:$16 sps:$4 sm:$0xff]   ;;  %v2739_v32 = vld [vmem:[%s3607_s3 + $0x1a8] ss:$16 sps:$4 sm:$0xff]  }
 0x241   :  { %2481 = vmatprep.subr.bf16.mxu1 %v3005_v33  ;;  %2503 = vmatprep.subr.bf16.mxu0 %v3011_v34  ;;  %v2744_v33 = vld [vmem:[%s3607_s3 + $0x184] ss:$16 sps:$4 sm:$0xff]   ;;  %v2747_v34 = vld [vmem:[%s3607_s3 + $0x18c] ss:$16 sps:$4 sm:$0xff]  }
 0x244   :  { %2482 = vmatpush3.bf16.msra.mxu1 %v3020_v36  ;;  %2504 = vmatpush3.bf16.msra.mxu0 %v3026_v37  ;;  %v2745_v36 = vld [vmem:[%s3607_s3 + $0x188] ss:$16 sps:$4 sm:$0xff]  }
 0x245   :  { %2596 = vmatprep.subr.bf16.mxu1 %v2790_v40  ;;  %1663 = vmatprep.subr.bf16.mxu0 %v2726_v16  ;;  %v2748_v37 = vld [vmem:[%s3609_s5 + $0x78] sm:$0xff]  }
 0x246   :  { %v2764_v16 = vld [vmem:[%s3609_s5 + $0x58] sm:$0xff]  }
 0x247   :  { %1466 = vmatmul.mubr.bf16.vlgmr.msra.gmra.mxu1 %v1409_v11  ;;  %1506 = vmatmul.mubr.bf16.vlgmr.msra.gmra.mxu0 %v1424_v12  ;;  %v2759_v11 = vld [vmem:[%s3609_s5 + $0xa8] sm:$0xff]   ;;  %v2760_v12 = vld [vmem:[%s3609_s5 + $0x60] sm:$0xff]  }
 0x248   :  { %2597 = vmatpush3.bf16.msra.mxu1 %v3046_v45  ;;  %2604 = vmatprep.mubr.msk.bf16.mxu1 %vm2791_vm0, %v2790_v40 }
 0x249   :  { %2598 = vmatprep.subr.bf16.mxu1 %v2790_v40  ;;  %1687 = vmatprep.mubr.bf16.mxu0 %v2792_v54 }
 0x24a   :  { %1664 = vmatpush1.bf16.msra.mxu0 %v2724_v18  ;;  %v2766_v18 = vld [vmem:[%s3609_s5 + $0x18] sm:$0xff]  }
 0x24b   :  { %1665 = vmatprep.subr.bf16.mxu0 %v2732_v20  ;;  %v2768_v20 = vld [vmem:[%s3609_s5 + $0x50] sm:$0xff]  }
 0x24c   :  { %2599 = vmatpush3.bf16.msra.mxu1 %v3054_v50 }
 0x24d   :  { %2600 = vmatprep.subr.bf16.mxu1 %v2790_v40 }
 0x24e   :  { %1666 = vmatpush1.bf16.msra.mxu0 %v2730_v25  ;;  %v2770_v25 = vld [vmem:[%s3609_s5 + $0x10] sm:$0xff]  }
 0x24f   :  { %1667 = vmatprep.subr.bf16.mxu0 %v2738_v27  ;;  %v2772_v27 = vld [vmem:[%s3609_s5 + $0x48] sm:$0xff]  }
 0x250   :  { %2601 = vmatpush3.bf16.msra.mxu1 %v3066_v53 }
 0x251   :  { %2602 = vmatprep.subr.bf16.mxu1 %v2790_v40  ;;  %v2749_v40 = vld [vmem:[%s3609_s5 + $0xf8] sm:$0xff]  }
 0x252   :  { %1668 = vmatpush1.bf16.msra.mxu0 %v2736_v31  ;;  %v2774_v31 = vld [vmem:[%s3609_s5 + $0x8] sm:$0xff]  }
 0x253   :  { %1669 = vmatprep.subr.bf16.mxu0 %v2744_v33  ;;  %v2776_v33 = vld [vmem:[%s3609_s5 + $0x40] sm:$0xff]  }
 0x254   :  { %2603 = vmatpush3.bf16.msra.mxu1 %v3076_v55 }
 0x255   :  { %1704 = vmatprep.subr.bf16.mxu1 %v2729_v17  ;;  %v2765_v17 = vld [vmem:[%s3609_s5 + $0xd8] sm:$0xff]  }
 0x256   :  { %1670 = vmatpush1.bf16.msra.mxu0 %v2742_v35  ;;  %v2778_v35 = vld [vmem:[%s3609_s5] sm:$0xff]  }
 0x257   :  { %2605 = vmatmul.mubr.msk.bf16.vlgmr.msra.gmra.mxu1 %vm367_vm1, %v1416_v15  ;;  %2516 = vmatprep.subr.bf16.mxu0 %v2748_v37  ;;  %v2763_v15 = vld [vmem:[%s3609_s5 + $0xa0] sm:$0xff]   ;;  %v1745_v37 = vsub.s32 0, %v2987_v30 }
 0x258   :  { %1728 = vmatprep.mubr.bf16.mxu1 %v2792_v54  ;;  %1705 = vmatpush1.bf16.msra.mxu1 %v2727_v19  ;;  %v2767_v19 = vld [vmem:[%s3609_s5 + $0x98] sm:$0xff]  }
 0x259   :  { %1706 = vmatprep.subr.bf16.mxu1 %v2735_v21  ;;  %v2769_v21 = vld [vmem:[%s3609_s5 + $0xd0] sm:$0xff]  }
 0x25c   :  { %1707 = vmatpush1.bf16.msra.mxu1 %v2733_v26  ;;  %v2771_v26 = vld [vmem:[%s3609_s5 + $0x90] sm:$0xff]  }
 0x25d   :  { %1708 = vmatprep.subr.bf16.mxu1 %v2741_v28  ;;  %v2773_v28 = vld [vmem:[%s3609_s5 + $0xc8] sm:$0xff]  }
 0x260   :  { %1709 = vmatpush1.bf16.msra.mxu1 %v2739_v32  ;;  %v2775_v32 = vld [vmem:[%s3609_s5 + $0x88] sm:$0xff]  }
 0x261   :  { %1710 = vmatprep.subr.bf16.mxu1 %v2747_v34  ;;  %v2777_v34 = vld [vmem:[%s3609_s5 + $0xc0] sm:$0xff]  }
 0x264   :  { %1711 = vmatpush1.bf16.msra.mxu1 %v2745_v36  ;;  %v2779_v36 = vld [vmem:[%s3609_s5 + $0x80] sm:$0xff]  }
 0x265   :  { %2538 = vmatprep.subr.bf16.mxu1 %v2749_v40  ;;  %v1753_v40 = vsub.s32 2, %v2987_v30 }
 0x2e7   :  { %v1332_v45 = vpop.f32.mrf.mxu1  ;;  %v1373_v50 = vpop.f32.mrf.mxu0 }
 0x2e8   :  { %v3484_v53 = vadd.f32 %v1332_v45, %v3344_v39  ;;  %v3487_v55 = vadd.f32 %v1373_v50, %v3346_v2  ;;  %v1741_v45 = vld [vmem:[%s3610_s4] sm:$0xf]  ;;  %v1749_v50 = vsub.s32 1, %v2987_v30 }
 0x2e9   :  { %v1334_v54 = vpop.f32.mrf.mxu1  ;;  %v1375_v43 = vpop.f32.mrf.mxu0 }
 0x2ea   :  { %v3490_v44 = vadd.f32 %v1334_v54, %v3348_v5  ;;  %v3493_v46 = vadd.f32 %v1375_v43, %v3350_v0  ;;  %v1757_v54 = vsub.s32 3, %v2987_v30  ;;  %v1746_v43 = vrot.slane %v1741_v45, %v1745_v37 }
 0x2eb   :  { %v1336_v47 = vpop.f32.mrf.mxu1  ;;  %v1377_v48 = vpop.f32.mrf.mxu0 }
 0x2ec   :  { %v1754_v47 = vrot.slane %v1741_v45, %v1753_v40 }
 0x2ed   :  { %v1337_v49 = vpop.f32.mrf.mxu1  ;;  %v1378_v51 = vpop.f32.mrf.mxu0 }
 0x307   :  { %v2483_v52 = vpop.f32.mrf.mxu1  ;;  %v2505_v56 = vpop.f32.mrf.mxu0 }
 0x309   :  { %v2484_v57 = vpop.f32.mrf.mxu1  ;;  %v2506_v39 = vpop.f32.mrf.mxu0 }
 0x30a   :  { %v2485_v62 = vadd.f32 %v2484_v57, %v2483_v52  ;;  %v2507_v5 = vadd.f32 %v2506_v39, %v2505_v56  ;;  %v1750_v56 = vrot.slane %v1741_v45, %v1749_v50  ;;  %v1758_v57 = vrot.slane %v1741_v45, %v1757_v54 }
 0x30b   :  { %v2486_v60 = vpop.f32.mrf.mxu1  ;;  %v2508_v61 = vpop.f32.mrf.mxu0 }
 0x30c   :  { %v1468_v63 = vadd.f32 %v2485_v62, %v3184_v59  ;;  %v2752_v59 = vld [vmem:[%s3609_s5 + $0x70] sm:$0xff]  }
 0x30d   :  { %v2487_v2 = vpop.f32.mrf.mxu1  ;;  %v2509_v58 = vpop.f32.mrf.mxu0 }
 0x30e   :  { %v1508_v22 = vadd.f32 %v2507_v5, %v1468_v63 }
 0x317   :  { %v1547_v23 = vpop.f32.mrf.mxu1 }
 0x318   :  { %v1548_v0 = vadd.f32 %v1547_v23, %v1508_v22 }
 0x319   :  { %v2606_v38 = vpop.f32.mrf.mxu1 }
 0x31a   :  { %v1553_v41 = vmax.f32 %v1548_v0, 0.0 }
 0x31b   :  { %v1550_v24 = vpop.f32.mrf.mxu1 }
 0x31c   :  { %v1554_v4 = vpack.c.bf16 %v1553_v41, %v1553_v41 }
 0x31d   :  { %v2607_v6 = vpop.f32.mrf.mxu1 }
 0x31e   :  { %2285 = vmatmul.mubr.msk.bf16.vlgmr.msra.gmra.mxu0 %vm367_vm1, %v1554_v4  ;;  %2286 = vmatmul.mubr.msk.bf16.vlgmr.msra.gmra.mxu1 %vm367_vm1, %v1554_v4 }
 0x31f   :  { %2517 = vmatpush3.bf16.msra.mxu0 %v2750_v29  ;;  %2539 = vmatpush3.bf16.msra.mxu1 %v2751_v3 }
 0x320   :  { %2518 = vmatprep.subr.bf16.mxu0 %v2752_v59  ;;  %2540 = vmatprep.subr.bf16.mxu1 %v2753_v1  ;;  %v2287_v59 = vld [vmem:[%s3611_s6] ss:$0 sm:$0xff] }
 0x323   :  { %2519 = vmatpush3.bf16.msra.mxu0 %v2754_v7  ;;  %2541 = vmatpush3.bf16.msra.mxu1 %v2755_v8 }
 0x324   :  { %2520 = vmatprep.subr.bf16.mxu0 %v2756_v9  ;;  %2542 = vmatprep.subr.bf16.mxu1 %v2757_v10 }
 0x327   :  { %2521 = vmatpush3.bf16.msra.mxu0 %v2758_v42  ;;  %2543 = vmatpush3.bf16.msra.mxu1 %v2759_v11 }
 0x328   :  { %2522 = vmatprep.subr.bf16.mxu0 %v2760_v12  ;;  %2544 = vmatprep.subr.bf16.mxu1 %v2761_v13 }
 0x32b   :  { %2523 = vmatpush3.bf16.msra.mxu0 %v2762_v14  ;;  %2545 = vmatpush3.bf16.msra.mxu1 %v2763_v15 }
 0x32c   :  { %2524 = vmatprep.subr.bf16.mxu0 %v2764_v16  ;;  %2546 = vmatprep.subr.bf16.mxu1 %v2765_v17 }
 0x32f   :  { %2525 = vmatpush3.bf16.msra.mxu0 %v2766_v18  ;;  %2547 = vmatpush3.bf16.msra.mxu1 %v2767_v19 }
 0x330   :  { %2526 = vmatprep.subr.bf16.mxu0 %v2768_v20  ;;  %2548 = vmatprep.subr.bf16.mxu1 %v2769_v21 }
 0x333   :  { %2527 = vmatpush3.bf16.msra.mxu0 %v2770_v25  ;;  %2549 = vmatpush3.bf16.msra.mxu1 %v2771_v26 }
 0x334   :  { %2528 = vmatprep.subr.bf16.mxu0 %v2772_v27  ;;  %2550 = vmatprep.subr.bf16.mxu1 %v2773_v28 }
 0x337   :  { %2529 = vmatpush3.bf16.msra.mxu0 %v2774_v31  ;;  %2551 = vmatpush3.bf16.msra.mxu1 %v2775_v32 }
 0x338   :  { %2530 = vmatprep.subr.bf16.mxu0 %v2776_v33  ;;  %2552 = vmatprep.subr.bf16.mxu1 %v2777_v34 }
 0x33b   :  { %2531 = vmatpush3.bf16.msra.mxu0 %v2778_v35  ;;  %2553 = vmatpush3.bf16.msra.mxu1 %v2779_v36 }
 0x3de   :  { %v1689_v48 = vpop.f32.mrf.mxu0  ;;  %v1730_v49 = vpop.f32.mrf.mxu1 }
 0x3df   :  { %v1737_v51 = vadd.f32 %v1689_v48, %v3484_v53  ;;  %v1739_v52 = vadd.f32 %v1730_v49, %v3487_v55 }
 0x3e0   :  { %v1691_v39 = vpop.f32.mrf.mxu0  ;;  %v1732_v60 = vpop.f32.mrf.mxu1 }
 0x3e1   :  { %v1763_v61 = vadd.f32 %v1746_v43, %v1737_v51  ;;  %v1765_v2 = vadd.f32 %v1754_v47, %v1739_v52  ;;  %v1738_v58 = vadd.f32 %v1691_v39, %v3490_v44  ;;  %v1740_v62 = vadd.f32 %v1732_v60, %v3493_v46 }
 0x3e2   :  { %v1693_v63 = vpop.f32.mrf.mxu0  ;;  %v1734_v30 = vpop.f32.mrf.mxu1 }
 0x3e3   :  { %v1764_v5 = vadd.f32 %v1750_v56, %v1738_v58  ;;  %v1766_v22 = vadd.f32 %v1758_v57, %v1740_v62  ;;  %v1767_v23 = vmax.f32 %v1763_v61, 0.0  ;;  %v1769_v0 = vmax.f32 %v1765_v2, 0.0 }
 0x3e4   :  { %v1694_v38 = vpop.f32.mrf.mxu0  ;;  %v1735_v53 = vpop.f32.mrf.mxu1 }
 0x3e5   :  { %v1768_v41 = vmax.f32 %v1764_v5, 0.0  ;;  %v1770_v55 = vmax.f32 %v1766_v22, 0.0  ;;  %v1771_v3 = vpack.c.bf16 %v1767_v23, %v1767_v23  ;;  %v1773_v4 = vpack.c.bf16 %v1769_v0, %v1769_v0 }
 0x3e7   :  { %v1772_v24 = vpack.c.bf16 %v1768_v41, %v1768_v41  ;;  %v1774_v29 = vpack.c.bf16 %v1770_v55, %v1770_v55 }
 0x3e9   :  { %2070 = vmatprep.mubr.bf16.mxu0 %v1772_v24  ;;  %2110 = vmatprep.mubr.bf16.mxu1 %v1774_v29 }
 0x3ea   :  { %2071 = vmatmul.mubr.bf16.vlgmr.msra.gmra.mxu0 %v1771_v3  ;;  %2111 = vmatmul.mubr.bf16.vlgmr.msra.gmra.mxu1 %v1773_v4 }
 0x4aa   :  { %v2532_v44 = vpop.f32.mrf.mxu0  ;;  %v2554_v46 = vpop.f32.mrf.mxu1 }
 0x4ac   :  { %v2533_v1 = vpop.f32.mrf.mxu0  ;;  %v2555_v6 = vpop.f32.mrf.mxu1 }
 0x4ad   :  { %v2534_v7 = vadd.f32 %v2533_v1, %v2532_v44  ;;  %v2556_v42 = vadd.f32 %v2555_v6, %v2554_v46 }
 0x4ae   :  { %v2535_v8 = vpop.f32.mrf.mxu0  ;;  %v2557_v9 = vpop.f32.mrf.mxu1 }
 0x4af   :  { %v2073_v10 = vadd.f32 %v2534_v7, %v2287_v59 }
 0x4b0   :  { %v2536_v11 = vpop.f32.mrf.mxu0  ;;  %v2558_v12 = vpop.f32.mrf.mxu1 }
 0x4b1   :  { %v2113_v13 = vadd.f32 %v2556_v42, %v2073_v10 }
 0x4b3   :  { %2118 = vst [vmem:[%s3612_s7] sm:$0x3] %v2113_v13 }

</bundles_post_ra>
